<compile_context>
chip_gen: v7x
topology: tpu7x:2x2x1
jax: 0.10.0
libtpu: 0.0.40
codegen_flags: <defaults>
</compile_context>

<pallas_src>
import functools

import jax
import jax.numpy as jnp
from jax import lax
from jax.experimental import pallas as pl
from jax.experimental.pallas import tpu as pltpu

THRESHOLD = 1.0   # snn.Leaky default threshold
BN_EPS = 1e-5     # nn.BatchNorm1d default eps
LANE = 128


def _smog_kernel(beta1, beta2, tc, B, unroll,
                 x_ref, w1_ref, g1_ref, be1_ref,
                 w2_ref, g2_ref, be2_ref,
                 spk_ref, mem_ref,
                 mem1_sc, mem2_sc, cur1_sc):
    # mem1 = lif1.init_leaky(); mem2 = lif2.init_leaky()  (zeros, first grid step)
    @pl.when(pl.program_id(0) == 0)
    def _():
        mem1_sc[...] = jnp.zeros_like(mem1_sc)
        mem2_sc[...] = jnp.zeros_like(mem2_sc)

    # Time-invariant operands, loaded once per grid step (JAX does not CSE
    # broadcasts, so keep these out of the inner loop).
    w2 = w2_ref[...]                       # (H_pad, O_pad)
    g2 = g2_ref[...]                       # (1, O_pad)
    be2 = be2_ref[...]                     # (1, O_pad)

    # ---- layer 1 for the WHOLE time block (off the serial recurrence) ----
    # One big MXU matmul: (tc*B, D_in) x (D_in, H_pad).
    H_pad = w1_ref.shape[1]
    cur1 = jnp.dot(x_ref[...], w1_ref[...],
                   preferred_element_type=jnp.float32)          # (tc*B, H_pad)
    cur1 = cur1.reshape(tc, B, H_pad)                            # B==sublane-aligned split
    # Per-timestep BN1 batch statistics (centered two-pass variance).
    mu1 = jnp.mean(cur1, axis=1, keepdims=True)                  # (tc, 1, H_pad)
    cen1 = cur1 - mu1
    var1 = jnp.mean(cen1 * cen1, axis=1, keepdims=True)
    scale1 = g1_ref[...] * lax.rsqrt(var1 + BN_EPS)              # (tc, 1, H_pad)
    cur1_sc[...] = cen1 * scale1 + be1_ref[...]                  # normalized, in VMEM scratch

    # ---- serial recurrence: LIF1 -> fc2 -> BN2 -> LIF2 per timestep ----
    def step(tt, carry):
        m1, m2 = carry

        c1 = cur1_sc[tt]                                         # (B, H_pad)
        reset1 = jnp.where(m1 > THRESHOLD, THRESHOLD, 0.0)       # subtract-reset
        m1 = beta1 * m1 + c1 - reset1
        spk1 = (m1 > THRESHOLD).astype(jnp.float32)

        cur2 = jnp.dot(spk1, w2, preferred_element_type=jnp.float32)  # (B, O_pad)
        mu2 = jnp.mean(cur2, axis=0, keepdims=True)
        cen2 = cur2 - mu2
        var2 = jnp.mean(cen2 * cen2, axis=0, keepdims=True)
        cur2n = cen2 * (g2 * lax.rsqrt(var2 + BN_EPS)) + be2

        reset2 = jnp.where(m2 > THRESHOLD, THRESHOLD, 0.0)
        m2 = beta2 * m2 + cur2n - reset2

        spk_ref[tt] = jnp.where(m2 > THRESHOLD, 1.0, 0.0).astype(spk_ref.dtype)
        mem_ref[tt] = m2
        return (m1, m2)

    m1_f, m2_f = lax.fori_loop(0, tc, step, (mem1_sc[...], mem2_sc[...]),
                               unroll=unroll)
    mem1_sc[...] = m1_f
    mem2_sc[...] = m2_f


def _round_up(n, m):
    return ((n + m - 1) // m) * m


def _vmem_budget():
    cap = 64 * 1024 * 1024                     # conservative fallback (v7x per-TC)
    try:
        info = pltpu.get_tpu_info()
        cap = int(getattr(info, "vmem_capacity_bytes", cap))
    except Exception:
        pass
    return int(0.85 * cap)


def _solve_time_block(T, B, D_in, H_pad, O_pad, time_block, vmem_budget):
    """Pick tc so the pipeline's VMEM footprint fits the budget."""
    f32 = 4
    d_in_lanes = _round_up(D_in, LANE)         # VMEM tiles are lane-padded
    fixed = (2 * (D_in * H_pad + H_pad * O_pad + 2 * H_pad + 2 * O_pad) * f32  # weights (dbl-buf)
             + (B * H_pad + B * O_pad) * f32                                   # membrane carries
             + (2 << 20))                                                      # slack
    per_tc = (2 * B * d_in_lanes * f32         # x block, double-buffered
              + 2 * B * O_pad * 2              # spk out block (bf16), double-buffered
              + 2 * B * O_pad * f32            # mem out block (f32), double-buffered
              + 2 * B * H_pad * f32)           # cur1 scratch + compiler temporaries
    tc_max = (vmem_budget - fixed) // per_tc
    return int(max(1, min(time_block, T, tc_max)))


def smogovcdn_forward(x, params, beta1=0.9, beta2=0.9, time_block=128):
    """x: [T, B, D_in] float32.  Returns (spk_rec, mem_rec): [T, B, D_out] f32 each."""
    T, B, D_in = x.shape
    w1, b1, g1, be1, w2, b2, g2, be2 = params
    # b1/b2 are mathematically cancelled by training-mode BatchNorm (it subtracts
    # the batch mean); the kernel neither loads nor adds them.
    del b1, b2
    H = w1.shape[1]
    O = w2.shape[1]

    # Lane-pad BOTH feature dims to multiples of 128 with dead all-zero features
    # (they never spike and BatchNorm is per-feature), slice back afterwards.
    H_pad = _round_up(H, LANE)
    O_pad = _round_up(O, LANE)
    if H_pad != H:
        ph = H_pad - H
        w1 = jnp.pad(w1, ((0, 0), (0, ph)))
        g1 = jnp.pad(g1, ((0, 0), (0, ph)))
        be1 = jnp.pad(be1, ((0, 0), (0, ph)))
        w2 = jnp.pad(w2, ((0, ph), (0, 0)))
    if O_pad != O:
        po = O_pad - O
        w2 = jnp.pad(w2, ((0, 0), (0, po)))
        g2 = jnp.pad(g2, ((0, 0), (0, po)))
        be2 = jnp.pad(be2, ((0, 0), (0, po)))

    budget = _vmem_budget()
    tc = _solve_time_block(T, B, D_in, H_pad, O_pad, time_block, budget)

    # Pad T to a multiple of tc (padded steps run after the real ones; outputs
    # are sliced off), so awkward T never degrades to tc=1.
    T_pad = _round_up(T, tc)
    if T_pad != T:
        x = jnp.pad(x, ((0, T_pad - T), (0, 0), (0, 0)))
    x_flat = x.reshape(T_pad * B, D_in)        # pre-merge leading dims for the big fc1 matmul

    grid = (T_pad // tc,)
    unroll = int(max(1, min(8, tc)))

    kernel = functools.partial(_smog_kernel, float(beta1), float(beta2),
                               int(tc), int(B), unroll)

    const2d = lambda r, c: pl.BlockSpec((r, c), lambda g: (0, 0))

    spk_rec, mem_rec = pl.pallas_call(
        kernel,
        out_shape=(jax.ShapeDtypeStruct((T_pad, B, O_pad), jnp.bfloat16),
                   jax.ShapeDtypeStruct((T_pad, B, O_pad), jnp.float32)),
        grid_spec=pltpu.PrefetchScalarGridSpec(
            num_scalar_prefetch=0,
            grid=grid,
            in_specs=[
                pl.BlockSpec((tc * B, D_in), lambda g: (g, 0)),  # x time-block (flattened)
                const2d(D_in, H_pad),   # w1 (stored transposed: [D_in, H_pad])
                const2d(1, H_pad),      # bn1 gamma
                const2d(1, H_pad),      # bn1 beta
                const2d(H_pad, O_pad),  # w2 ([H_pad, O_pad])
                const2d(1, O_pad),      # bn2 gamma
                const2d(1, O_pad),      # bn2 beta
            ],
            out_specs=[
                pl.BlockSpec((tc, B, O_pad), lambda g: (g, 0, 0)),  # spk (bf16)
                pl.BlockSpec((tc, B, O_pad), lambda g: (g, 0, 0)),  # mem (f32)
            ],
            scratch_shapes=[
                pltpu.VMEM((B, H_pad), jnp.float32),        # mem1 carry
                pltpu.VMEM((B, O_pad), jnp.float32),        # mem2 carry
                pltpu.VMEM((tc, B, H_pad), jnp.float32),    # BN1-normalized cur1 block
            ],
        ),
        compiler_params=pltpu.CompilerParams(
            dimension_semantics=("arbitrary",),   # membrane carry => sequential time axis
            vmem_limit_bytes=budget),
    )(x_flat, w1, g1, be1, w2, g2, be2)

    spk_rec = spk_rec[:T, :, :O].astype(jnp.float32)
    mem_rec = mem_rec[:T, :, :O]
    return spk_rec, mem_rec


# ---------------- pure-JAX reference (mirrors the PyTorch forward) ----------------
def smogovcdn_reference(x, params, beta1=0.9, beta2=0.9):
    w1, b1, g1, be1, w2, b2, g2, be2 = params
    T, B, _ = x.shape
    H = w1.shape[1]
    O = w2.shape[1]
    mem1 = jnp.zeros((B, H), jnp.float32)
    mem2 = jnp.zeros((B, O), jnp.float32)
    spks, mems = [], []
    for t in range(T):
        cur1 = x[t] @ w1 + b1[0]
        mu = cur1.mean(0, keepdims=True)
        var = ((cur1 - mu) ** 2).mean(0, keepdims=True)
        cur1 = g1[0] * (cur1 - mu) / jnp.sqrt(var + BN_EPS) + be1[0]
        r1 = (mem1 > THRESHOLD).astype(jnp.float32)
        mem1 = beta1 * mem1 + cur1 - r1 * THRESHOLD
        spk1 = (mem1 > THRESHOLD).astype(jnp.float32)

        cur2 = spk1 @ w2 + b2[0]
        mu = cur2.mean(0, keepdims=True)
        var = ((cur2 - mu) ** 2).mean(0, keepdims=True)
        cur2 = g2[0] * (cur2 - mu) / jnp.sqrt(var + BN_EPS) + be2[0]
        r2 = (mem2 > THRESHOLD).astype(jnp.float32)
        mem2 = beta2 * mem2 + cur2 - r2 * THRESHOLD
        spk2 = (mem2 > THRESHOLD).astype(jnp.float32)
        spks.append(spk2)
        mems.append(mem2)
    return jnp.stack(spks), jnp.stack(mems)


def init_params(key, input_size, hidden_size, output_size):
    k1, k2, k3, k4 = jax.random.split(key, 4)
    # xavier_uniform_ on PyTorch weight [out, in] -> same bound; store transposed [in, out]
    bound1 = (6.0 / (input_size + hidden_size)) ** 0.5
    bound2 = (6.0 / (hidden_size + output_size)) ** 0.5
    w1 = jax.random.uniform(k1, (input_size, hidden_size), jnp.float32, -bound1, bound1)
    w2 = jax.random.uniform(k2, (hidden_size, output_size), jnp.float32, -bound2, bound2)
    # nn.Linear default bias init: U(-1/sqrt(fan_in), 1/sqrt(fan_in))
    bb1 = 1.0 / (input_size ** 0.5)
    bb2 = 1.0 / (hidden_size ** 0.5)
    b1 = jax.random.uniform(k3, (1, hidden_size), jnp.float32, -bb1, bb1)
    b2 = jax.random.uniform(k4, (1, output_size), jnp.float32, -bb2, bb2)
    g1 = jnp.ones((1, hidden_size), jnp.float32)    # bn1 weight
    be1 = jnp.zeros((1, hidden_size), jnp.float32)  # bn1 bias
    g2 = jnp.ones((1, output_size), jnp.float32)
    be2 = jnp.zeros((1, output_size), jnp.float32)
    return (w1, b1, g1, be1, w2, b2, g2, be2)


if __name__ == "__main__":
    T, B = 8, 8
    input_size, hidden_size, output_size = 16, 32, 8

    key = jax.random.PRNGKey(0)
    kx, kp = jax.random.split(key)
    x = jax.random.normal(kx, (T, B, input_size), jnp.float32)
    params = init_params(kp, input_size, hidden_size, output_size)

    spk_rec, mem_rec = smogovcdn_forward(x, params)
    jax.block_until_ready((spk_rec, mem_rec))

    spk_ref, mem_ref = smogovcdn_reference(x, params)
    assert spk_rec.shape == (T, B, output_size)
    assert mem_rec.shape == (T, B, output_size)
    assert bool(jnp.all(jnp.isfinite(mem_rec)))
    # Kernel drops the BN-cancelled biases and uses rsqrt instead of /sqrt;
    # expect only ~1e-5-level float drift vs the literal reference.
    assert jnp.allclose(mem_rec, mem_ref, atol=1e-3), "mem mismatch vs reference"
    # Spikes are hard threshold crossings; tolerate flips only where the
    # reference membrane sits numerically on the threshold.
    near_thr = jnp.abs(mem_ref - THRESHOLD) < 1e-2
    assert bool(jnp.all((spk_rec == spk_ref) | near_thr)), "spike mismatch vs reference"

    print("KERNEL_OK")
</pallas_src>

<mosaic_0001>
module attributes {stable_mosaic.version = 11 : i64} {
  func.func @_smog_kernel(%arg0: i32, %arg1: memref<64x16xf32, #tpu.memory_space<vmem>>, %arg2: memref<16x128xf32, #tpu.memory_space<vmem>>, %arg3: memref<1x128xf32, #tpu.memory_space<vmem>>, %arg4: memref<1x128xf32, #tpu.memory_space<vmem>>, %arg5: memref<128x128xf32, #tpu.memory_space<vmem>>, %arg6: memref<1x128xf32, #tpu.memory_space<vmem>>, %arg7: memref<1x128xf32, #tpu.memory_space<vmem>>, %arg8: memref<8x8x128xbf16, #tpu.memory_space<vmem>>, %arg9: memref<8x8x128xf32, #tpu.memory_space<vmem>>, %arg10: memref<8x128xf32, #tpu.memory_space<vmem>>, %arg11: memref<8x128xf32, #tpu.memory_space<vmem>>, %arg12: memref<8x8x128xf32, #tpu.memory_space<vmem>>) attributes {dimension_semantics = [#tpu.dimension_semantics<arbitrary>], iteration_bounds = array<i64: 1>, scalar_prefetch = 0 : i64, scratch_operands = 3 : i64, tpu.core_type = #tpu.core_type<tc>, window_params = [{transform_indices = @transform_0, window_bounds = array<i64: 64, 16>}, {pipeline_mode = #tpu.pipeline_mode<synchronous>, transform_indices = @transform_1, window_bounds = array<i64: 16, 128>}, {pipeline_mode = #tpu.pipeline_mode<synchronous>, transform_indices = @transform_2, window_bounds = array<i64: 1, 128>}, {pipeline_mode = #tpu.pipeline_mode<synchronous>, transform_indices = @transform_3, window_bounds = array<i64: 1, 128>}, {pipeline_mode = #tpu.pipeline_mode<synchronous>, transform_indices = @transform_4, window_bounds = array<i64: 128, 128>}, {pipeline_mode = #tpu.pipeline_mode<synchronous>, transform_indices = @transform_5, window_bounds = array<i64: 1, 128>}, {pipeline_mode = #tpu.pipeline_mode<synchronous>, transform_indices = @transform_6, window_bounds = array<i64: 1, 128>}, {transform_indices = @transform_7, window_bounds = array<i64: 8, 8, 128>}, {transform_indices = @transform_8, window_bounds = array<i64: 8, 8, 128>}]} {
    %c0_i32 = arith.constant 0 : i32
    %0 = arith.cmpi eq, %arg0, %c0_i32 : i32
    %1 = arith.extui %0 : i1 to i32
    %c0_i32_0 = arith.constant 0 : i32
    %2 = arith.cmpi ne, %1, %c0_i32_0 : i32
    scf.if %2 {
      %cst_223 = arith.constant 0.000000e+00 : f32
      %511 = vector.broadcast %cst_223 : f32 to vector<8x128xf32>
      %c0_224 = arith.constant 0 : index
      %c0_225 = arith.constant 0 : index
      %512 = vector.load %arg10[%c0_224, %c0_225] : memref<8x128xf32, #tpu.memory_space<vmem>>, vector<8x128xf32>
      tpu.vector_store %arg10[%c0_224, %c0_225], %511 {strides = array<i32>} : memref<8x128xf32, #tpu.memory_space<vmem>>, vector<8x128xf32>,
      %cst_226 = arith.constant 0.000000e+00 : f32
      %513 = vector.broadcast %cst_226 : f32 to vector<8x128xf32>
      %c0_227 = arith.constant 0 : index
      %c0_228 = arith.constant 0 : index
      %514 = vector.load %arg11[%c0_227, %c0_228] : memref<8x128xf32, #tpu.memory_space<vmem>>, vector<8x128xf32>
      tpu.vector_store %arg11[%c0_227, %c0_228], %513 {strides = array<i32>} : memref<8x128xf32, #tpu.memory_space<vmem>>, vector<8x128xf32>,
    } else {
    }
    %c0 = arith.constant 0 : index
    %c0_1 = arith.constant 0 : index
    %3 = vector.load %arg5[%c0, %c0_1] : memref<128x128xf32, #tpu.memory_space<vmem>>, vector<128x128xf32>
    %c0_2 = arith.constant 0 : index
    %c0_3 = arith.constant 0 : index
    %4 = vector.load %arg6[%c0_2, %c0_3] : memref<1x128xf32, #tpu.memory_space<vmem>>, vector<1x128xf32>
    %c0_4 = arith.constant 0 : index
    %c0_5 = arith.constant 0 : index
    %5 = vector.load %arg7[%c0_4, %c0_5] : memref<1x128xf32, #tpu.memory_space<vmem>>, vector<1x128xf32>
    %c0_6 = arith.constant 0 : index
    %c0_7 = arith.constant 0 : index
    %6 = vector.load %arg1[%c0_6, %c0_7] : memref<64x16xf32, #tpu.memory_space<vmem>>, vector<64x16xf32>
    %c0_8 = arith.constant 0 : index
    %c0_9 = arith.constant 0 : index
    %7 = vector.load %arg2[%c0_8, %c0_9] : memref<16x128xf32, #tpu.memory_space<vmem>>, vector<16x128xf32>
    %cst = arith.constant dense<0.000000e+00> : vector<64x128xf32>
    %8 = tpu.matmul %6, %7, %cst {dimension_numbers = #tpu.dot_dimension_numbers<[1], [0], [0], [1], [0, 0, 1, 1], [], []>} : vector<64x16xf32>, vector<16x128xf32>, vector<64x128xf32> -> vector<64x128xf32>
    %9 = vector.shape_cast %8 : vector<64x128xf32> to vector<8x8x128xf32>
    %cst_10 = arith.constant dense<0.000000e+00> : vector<8x128xf32>
    %10 = vector.multi_reduction <add>, %9, %cst_10 [1] : vector<8x8x128xf32> to vector<8x128xf32>
    %11 = vector.shape_cast %10 : vector<8x128xf32> to vector<8x1x128xf32>
    %cst_11 = arith.constant 8.000000e+00 : f32
    %12 = vector.broadcast %cst_11 : f32 to vector<8x1x128xf32>
    %13 = arith.divf %11, %12 : vector<8x1x128xf32>
    %14 = vector.broadcast %13 : vector<8x1x128xf32> to vector<8x8x128xf32>
    %15 = arith.subf %9, %14 : vector<8x8x128xf32>
    %16 = arith.mulf %15, %15 : vector<8x8x128xf32>
    %cst_12 = arith.constant dense<0.000000e+00> : vector<8x128xf32>
    %17 = vector.multi_reduction <add>, %16, %cst_12 [1] : vector<8x8x128xf32> to vector<8x128xf32>
    %18 = vector.shape_cast %17 : vector<8x128xf32> to vector<8x1x128xf32>
    %cst_13 = arith.constant 8.000000e+00 : f32
    %19 = vector.broadcast %cst_13 : f32 to vector<8x1x128xf32>
    %20 = arith.divf %18, %19 : vector<8x1x128xf32>
    %c0_14 = arith.constant 0 : index
    %c0_15 = arith.constant 0 : index
    %21 = vector.load %arg3[%c0_14, %c0_15] : memref<1x128xf32, #tpu.memory_space<vmem>>, vector<1x128xf32>
    %cst_16 = arith.constant 9.99999974E-6 : f32
    %22 = vector.broadcast %cst_16 : f32 to vector<8x1x128xf32>
    %23 = arith.addf %20, %22 : vector<8x1x128xf32>
    %24 = math.rsqrt %23 : vector<8x1x128xf32>
    %25 = vector.shape_cast %21 : vector<1x128xf32> to vector<1x1x128xf32>
    %26 = vector.broadcast %25 : vector<1x1x128xf32> to vector<8x1x128xf32>
    %27 = arith.mulf %26, %24 : vector<8x1x128xf32>
    %28 = vector.broadcast %27 : vector<8x1x128xf32> to vector<8x8x128xf32>
    %29 = arith.mulf %15, %28 : vector<8x8x128xf32>
    %c0_17 = arith.constant 0 : index
    %c0_18 = arith.constant 0 : index
    %30 = vector.load %arg4[%c0_17, %c0_18] : memref<1x128xf32, #tpu.memory_space<vmem>>, vector<1x128xf32>
    %31 = vector.shape_cast %30 : vector<1x128xf32> to vector<1x1x128xf32>
    %32 = vector.broadcast %31 : vector<1x1x128xf32> to vector<8x8x128xf32>
    %33 = arith.addf %29, %32 : vector<8x8x128xf32>
    %c0_19 = arith.constant 0 : index
    %c0_20 = arith.constant 0 : index
    %c0_21 = arith.constant 0 : index
    %34 = vector.load %arg12[%c0_19, %c0_20, %c0_21] : memref<8x8x128xf32, #tpu.memory_space<vmem>>, vector<8x8x128xf32>
    tpu.vector_store %arg12[%c0_19, %c0_20, %c0_21], %33 {strides = array<i32>} : memref<8x8x128xf32, #tpu.memory_space<vmem>>, vector<8x8x128xf32>,
    %c0_22 = arith.constant 0 : index
    %c0_23 = arith.constant 0 : index
    %35 = vector.load %arg10[%c0_22, %c0_23] : memref<8x128xf32, #tpu.memory_space<vmem>>, vector<8x128xf32>
    %c0_24 = arith.constant 0 : index
    %c0_25 = arith.constant 0 : index
    %36 = vector.load %arg11[%c0_24, %c0_25] : memref<8x128xf32, #tpu.memory_space<vmem>>, vector<8x128xf32>
    %c0_i32_26 = arith.constant 0 : i32
    %37 = arith.index_cast %c0_i32_26 : i32 to index
    %c0_27 = arith.constant 0 : index
    %c0_28 = arith.constant 0 : index
    %38 = vector.load %arg12[%37, %c0_27, %c0_28] : memref<8x8x128xf32, #tpu.memory_space<vmem>>, vector<1x8x128xf32>
    %39 = vector.shape_cast %38 : vector<1x8x128xf32> to vector<8x128xf32>
    %cst_29 = arith.constant 1.000000e+00 : f32
    %40 = vector.broadcast %cst_29 : f32 to vector<8x128xf32>
    %41 = arith.cmpf ogt, %35, %40 : vector<8x128xf32>
    %cst_30 = arith.constant 1.000000e+00 : f32
    %cst_31 = arith.constant 0.000000e+00 : f32
    %42 = vector.broadcast %cst_30 : f32 to vector<8x128xf32>
    %43 = vector.broadcast %cst_31 : f32 to vector<8x128xf32>
    %44 = arith.select %41, %42, %43 : vector<8x128xi1>, vector<8x128xf32>
    %cst_32 = arith.constant 0.899999976 : f32
    %45 = vector.broadcast %cst_32 : f32 to vector<8x128xf32>
    %46 = arith.mulf %45, %35 : vector<8x128xf32>
    %47 = arith.addf %46, %39 : vector<8x128xf32>
    %48 = arith.subf %47, %44 : vector<8x128xf32>
    %cst_33 = arith.constant 1.000000e+00 : f32
    %49 = vector.broadcast %cst_33 : f32 to vector<8x128xf32>
    %50 = arith.cmpf ogt, %48, %49 : vector<8x128xf32>
    %51 = arith.extui %50 : vector<8x128xi1> to vector<8x128xi32>
    %52 = arith.sitofp %51 : vector<8x128xi32> to vector<8x128xf32>
    %cst_34 = arith.constant dense<0.000000e+00> : vector<8x128xf32>
    %53 = tpu.matmul %52, %3, %cst_34 {dimension_numbers = #tpu.dot_dimension_numbers<[1], [0], [0], [1], [0, 0, 1, 1], [], []>} : vector<8x128xf32>, vector<128x128xf32>, vector<8x128xf32> -> vector<8x128xf32>
    %cst_35 = arith.constant dense<0.000000e+00> : vector<128xf32>
    %54 = vector.multi_reduction <add>, %53, %cst_35 [0] : vector<8x128xf32> to vector<128xf32>
    %55 = vector.shape_cast %54 : vector<128xf32> to vector<1x128xf32>
    %cst_36 = arith.constant 8.000000e+00 : f32
    %56 = vector.broadcast %cst_36 : f32 to vector<1x128xf32>
    %57 = arith.divf %55, %56 : vector<1x128xf32>
    %58 = vector.broadcast %57 : vector<1x128xf32> to vector<8x128xf32>
    %59 = arith.subf %53, %58 : vector<8x128xf32>
    %60 = arith.mulf %59, %59 : vector<8x128xf32>
    %cst_37 = arith.constant dense<0.000000e+00> : vector<128xf32>
    %61 = vector.multi_reduction <add>, %60, %cst_37 [0] : vector<8x128xf32> to vector<128xf32>
    %62 = vector.shape_cast %61 : vector<128xf32> to vector<1x128xf32>
    %cst_38 = arith.constant 8.000000e+00 : f32
    %63 = vector.broadcast %cst_38 : f32 to vector<1x128xf32>
    %64 = arith.divf %62, %63 : vector<1x128xf32>
    %cst_39 = arith.constant 9.99999974E-6 : f32
    %65 = vector.broadcast %cst_39 : f32 to vector<1x128xf32>
    %66 = arith.addf %64, %65 : vector<1x128xf32>
    %67 = math.rsqrt %66 : vector<1x128xf32>
    %68 = arith.mulf %4, %67 : vector<1x128xf32>
    %69 = vector.broadcast %68 : vector<1x128xf32> to vector<8x128xf32>
    %70 = arith.mulf %59, %69 : vector<8x128xf32>
    %71 = vector.broadcast %5 : vector<1x128xf32> to vector<8x128xf32>
    %72 = arith.addf %70, %71 : vector<8x128xf32>
    %cst_40 = arith.constant 1.000000e+00 : f32
    %73 = vector.broadcast %cst_40 : f32 to vector<8x128xf32>
    %74 = arith.cmpf ogt, %36, %73 : vector<8x128xf32>
    %cst_41 = arith.constant 1.000000e+00 : f32
    %cst_42 = arith.constant 0.000000e+00 : f32
    %75 = vector.broadcast %cst_41 : f32 to vector<8x128xf32>
    %76 = vector.broadcast %cst_42 : f32 to vector<8x128xf32>
    %77 = arith.select %74, %75, %76 : vector<8x128xi1>, vector<8x128xf32>
    %cst_43 = arith.constant 0.899999976 : f32
    %78 = vector.broadcast %cst_43 : f32 to vector<8x128xf32>
    %79 = arith.mulf %78, %36 : vector<8x128xf32>
    %80 = arith.addf %79, %72 : vector<8x128xf32>
    %81 = arith.subf %80, %77 : vector<8x128xf32>
    %cst_44 = arith.constant 1.000000e+00 : f32
    %82 = vector.broadcast %cst_44 : f32 to vector<8x128xf32>
    %83 = arith.cmpf ogt, %81, %82 : vector<8x128xf32>
    %cst_45 = arith.constant 1.000000e+00 : f32
    %cst_46 = arith.constant 0.000000e+00 : f32
    %84 = vector.broadcast %cst_45 : f32 to vector<8x128xf32>
    %85 = vector.broadcast %cst_46 : f32 to vector<8x128xf32>
    %86 = arith.select %83, %84, %85 : vector<8x128xi1>, vector<8x128xf32>
    %87 = arith.truncf %86 : vector<8x128xf32> to vector<8x128xbf16>
    %88 = arith.index_cast %c0_i32_26 : i32 to index
    %c0_47 = arith.constant 0 : index
    %c0_48 = arith.constant 0 : index
    %89 = vector.load %arg8[%88, %c0_47, %c0_48] : memref<8x8x128xbf16, #tpu.memory_space<vmem>>, vector<1x8x128xbf16>
    %90 = vector.shape_cast %89 : vector<1x8x128xbf16> to vector<8x128xbf16>
    %91 = vector.shape_cast %87 : vector<8x128xbf16> to vector<1x8x128xbf16>
    tpu.vector_store %arg8[%88, %c0_47, %c0_48], %91 {strides = array<i32>} : memref<8x8x128xbf16, #tpu.memory_space<vmem>>, vector<1x8x128xbf16>,
    %92 = arith.index_cast %c0_i32_26 : i32 to index
    %c0_49 = arith.constant 0 : index
    %c0_50 = arith.constant 0 : index
    %93 = vector.load %arg9[%92, %c0_49, %c0_50] : memref<8x8x128xf32, #tpu.memory_space<vmem>>, vector<1x8x128xf32>
    %94 = vector.shape_cast %93 : vector<1x8x128xf32> to vector<8x128xf32>
    %95 = vector.shape_cast %81 : vector<8x128xf32> to vector<1x8x128xf32>
    tpu.vector_store %arg9[%92, %c0_49, %c0_50], %95 {strides = array<i32>} : memref<8x8x128xf32, #tpu.memory_space<vmem>>, vector<1x8x128xf32>,
    %c1_i32 = arith.constant 1 : i32
    %96 = arith.index_cast %c1_i32 : i32 to index
    %c0_51 = arith.constant 0 : index
    %c0_52 = arith.constant 0 : index
    %97 = vector.load %arg12[%96, %c0_51, %c0_52] : memref<8x8x128xf32, #tpu.memory_space<vmem>>, vector<1x8x128xf32>
    %98 = vector.shape_cast %97 : vector<1x8x128xf32> to vector<8x128xf32>
    %cst_53 = arith.constant 1.000000e+00 : f32
    %99 = vector.broadcast %cst_53 : f32 to vector<8x128xf32>
    %100 = arith.cmpf ogt, %48, %99 : vector<8x128xf32>
    %cst_54 = arith.constant 1.000000e+00 : f32
    %cst_55 = arith.constant 0.000000e+00 : f32
    %101 = vector.broadcast %cst_54 : f32 to vector<8x128xf32>
    %102 = vector.broadcast %cst_55 : f32 to vector<8x128xf32>
    %103 = arith.select %100, %101, %102 : vector<8x128xi1>, vector<8x128xf32>
    %cst_56 = arith.constant 0.899999976 : f32
    %104 = vector.broadcast %cst_56 : f32 to vector<8x128xf32>
    %105 = arith.mulf %104, %48 : vector<8x128xf32>
    %106 = arith.addf %105, %98 : vector<8x128xf32>
    %107 = arith.subf %106, %103 : vector<8x128xf32>
    %cst_57 = arith.constant 1.000000e+00 : f32
    %108 = vector.broadcast %cst_57 : f32 to vector<8x128xf32>
    %109 = arith.cmpf ogt, %107, %108 : vector<8x128xf32>
    %110 = arith.extui %109 : vector<8x128xi1> to vector<8x128xi32>
    %111 = arith.sitofp %110 : vector<8x128xi32> to vector<8x128xf32>
    %cst_58 = arith.constant dense<0.000000e+00> : vector<8x128xf32>
    %112 = tpu.matmul %111, %3, %cst_58 {dimension_numbers = #tpu.dot_dimension_numbers<[1], [0], [0], [1], [0, 0, 1, 1], [], []>} : vector<8x128xf32>, vector<128x128xf32>, vector<8x128xf32> -> vector<8x128xf32>
    %cst_59 = arith.constant dense<0.000000e+00> : vector<128xf32>
    %113 = vector.multi_reduction <add>, %112, %cst_59 [0] : vector<8x128xf32> to vector<128xf32>
    %114 = vector.shape_cast %113 : vector<128xf32> to vector<1x128xf32>
    %cst_60 = arith.constant 8.000000e+00 : f32
    %115 = vector.broadcast %cst_60 : f32 to vector<1x128xf32>
    %116 = arith.divf %114, %115 : vector<1x128xf32>
    %117 = vector.broadcast %116 : vector<1x128xf32> to vector<8x128xf32>
    %118 = arith.subf %112, %117 : vector<8x128xf32>
    %119 = arith.mulf %118, %118 : vector<8x128xf32>
    %cst_61 = arith.constant dense<0.000000e+00> : vector<128xf32>
    %120 = vector.multi_reduction <add>, %119, %cst_61 [0] : vector<8x128xf32> to vector<128xf32>
    %121 = vector.shape_cast %120 : vector<128xf32> to vector<1x128xf32>
    %cst_62 = arith.constant 8.000000e+00 : f32
    %122 = vector.broadcast %cst_62 : f32 to vector<1x128xf32>
    %123 = arith.divf %121, %122 : vector<1x128xf32>
    %cst_63 = arith.constant 9.99999974E-6 : f32
    %124 = vector.broadcast %cst_63 : f32 to vector<1x128xf32>
    %125 = arith.addf %123, %124 : vector<1x128xf32>
    %126 = math.rsqrt %125 : vector<1x128xf32>
    %127 = arith.mulf %4, %126 : vector<1x128xf32>
    %128 = vector.broadcast %127 : vector<1x128xf32> to vector<8x128xf32>
    %129 = arith.mulf %118, %128 : vector<8x128xf32>
    %130 = vector.broadcast %5 : vector<1x128xf32> to vector<8x128xf32>
    %131 = arith.addf %129, %130 : vector<8x128xf32>
    %cst_64 = arith.constant 1.000000e+00 : f32
    %132 = vector.broadcast %cst_64 : f32 to vector<8x128xf32>
    %133 = arith.cmpf ogt, %81, %132 : vector<8x128xf32>
    %cst_65 = arith.constant 1.000000e+00 : f32
    %cst_66 = arith.constant 0.000000e+00 : f32
    %134 = vector.broadcast %cst_65 : f32 to vector<8x128xf32>
    %135 = vector.broadcast %cst_66 : f32 to vector<8x128xf32>
    %136 = arith.select %133, %134, %135 : vector<8x128xi1>, vector<8x128xf32>
    %cst_67 = arith.constant 0.899999976 : f32
    %137 = vector.broadcast %cst_67 : f32 to vector<8x128xf32>
    %138 = arith.mulf %137, %81 : vector<8x128xf32>
    %139 = arith.addf %138, %131 : vector<8x128xf32>
    %140 = arith.subf %139, %136 : vector<8x128xf32>
    %cst_68 = arith.constant 1.000000e+00 : f32
    %141 = vector.broadcast %cst_68 : f32 to vector<8x128xf32>
    %142 = arith.cmpf ogt, %140, %141 : vector<8x128xf32>
    %cst_69 = arith.constant 1.000000e+00 : f32
    %cst_70 = arith.constant 0.000000e+00 : f32
    %143 = vector.broadcast %cst_69 : f32 to vector<8x128xf32>
    %144 = vector.broadcast %cst_70 : f32 to vector<8x128xf32>
    %145 = arith.select %142, %143, %144 : vector<8x128xi1>, vector<8x128xf32>
    %146 = arith.truncf %145 : vector<8x128xf32> to vector<8x128xbf16>
    %147 = arith.index_cast %c1_i32 : i32 to index
    %c0_71 = arith.constant 0 : index
    %c0_72 = arith.constant 0 : index
    %148 = vector.load %arg8[%147, %c0_71, %c0_72] : memref<8x8x128xbf16, #tpu.memory_space<vmem>>, vector<1x8x128xbf16>
    %149 = vector.shape_cast %148 : vector<1x8x128xbf16> to vector<8x128xbf16>
    %150 = vector.shape_cast %146 : vector<8x128xbf16> to vector<1x8x128xbf16>
    tpu.vector_store %arg8[%147, %c0_71, %c0_72], %150 {strides = array<i32>} : memref<8x8x128xbf16, #tpu.memory_space<vmem>>, vector<1x8x128xbf16>,
    %151 = arith.index_cast %c1_i32 : i32 to index
    %c0_73 = arith.constant 0 : index
    %c0_74 = arith.constant 0 : index
    %152 = vector.load %arg9[%151, %c0_73, %c0_74] : memref<8x8x128xf32, #tpu.memory_space<vmem>>, vector<1x8x128xf32>
    %153 = vector.shape_cast %152 : vector<1x8x128xf32> to vector<8x128xf32>
    %154 = vector.shape_cast %140 : vector<8x128xf32> to vector<1x8x128xf32>
    tpu.vector_store %arg9[%151, %c0_73, %c0_74], %154 {strides = array<i32>} : memref<8x8x128xf32, #tpu.memory_space<vmem>>, vector<1x8x128xf32>,
    %c2_i32 = arith.constant 2 : i32
    %155 = arith.index_cast %c2_i32 : i32 to index
    %c0_75 = arith.constant 0 : index
    %c0_76 = arith.constant 0 : index
    %156 = vector.load %arg12[%155, %c0_75, %c0_76] : memref<8x8x128xf32, #tpu.memory_space<vmem>>, vector<1x8x128xf32>
    %157 = vector.shape_cast %156 : vector<1x8x128xf32> to vector<8x128xf32>
    %cst_77 = arith.constant 1.000000e+00 : f32
    %158 = vector.broadcast %cst_77 : f32 to vector<8x128xf32>
    %159 = arith.cmpf ogt, %107, %158 : vector<8x128xf32>
    %cst_78 = arith.constant 1.000000e+00 : f32
    %cst_79 = arith.constant 0.000000e+00 : f32
    %160 = vector.broadcast %cst_78 : f32 to vector<8x128xf32>
    %161 = vector.broadcast %cst_79 : f32 to vector<8x128xf32>
    %162 = arith.select %159, %160, %161 : vector<8x128xi1>, vector<8x128xf32>
    %cst_80 = arith.constant 0.899999976 : f32
    %163 = vector.broadcast %cst_80 : f32 to vector<8x128xf32>
    %164 = arith.mulf %163, %107 : vector<8x128xf32>
    %165 = arith.addf %164, %157 : vector<8x128xf32>
    %166 = arith.subf %165, %162 : vector<8x128xf32>
    %cst_81 = arith.constant 1.000000e+00 : f32
    %167 = vector.broadcast %cst_81 : f32 to vector<8x128xf32>
    %168 = arith.cmpf ogt, %166, %167 : vector<8x128xf32>
    %169 = arith.extui %168 : vector<8x128xi1> to vector<8x128xi32>
    %170 = arith.sitofp %169 : vector<8x128xi32> to vector<8x128xf32>
    %cst_82 = arith.constant dense<0.000000e+00> : vector<8x128xf32>
    %171 = tpu.matmul %170, %3, %cst_82 {dimension_numbers = #tpu.dot_dimension_numbers<[1], [0], [0], [1], [0, 0, 1, 1], [], []>} : vector<8x128xf32>, vector<128x128xf32>, vector<8x128xf32> -> vector<8x128xf32>
    %cst_83 = arith.constant dense<0.000000e+00> : vector<128xf32>
    %172 = vector.multi_reduction <add>, %171, %cst_83 [0] : vector<8x128xf32> to vector<128xf32>
    %173 = vector.shape_cast %172 : vector<128xf32> to vector<1x128xf32>
    %cst_84 = arith.constant 8.000000e+00 : f32
    %174 = vector.broadcast %cst_84 : f32 to vector<1x128xf32>
    %175 = arith.divf %173, %174 : vector<1x128xf32>
    %176 = vector.broadcast %175 : vector<1x128xf32> to vector<8x128xf32>
    %177 = arith.subf %171, %176 : vector<8x128xf32>
    %178 = arith.mulf %177, %177 : vector<8x128xf32>
    %cst_85 = arith.constant dense<0.000000e+00> : vector<128xf32>
    %179 = vector.multi_reduction <add>, %178, %cst_85 [0] : vector<8x128xf32> to vector<128xf32>
    %180 = vector.shape_cast %179 : vector<128xf32> to vector<1x128xf32>
    %cst_86 = arith.constant 8.000000e+00 : f32
    %181 = vector.broadcast %cst_86 : f32 to vector<1x128xf32>
    %182 = arith.divf %180, %181 : vector<1x128xf32>
    %cst_87 = arith.constant 9.99999974E-6 : f32
    %183 = vector.broadcast %cst_87 : f32 to vector<1x128xf32>
    %184 = arith.addf %182, %183 : vector<1x128xf32>
    %185 = math.rsqrt %184 : vector<1x128xf32>
    %186 = arith.mulf %4, %185 : vector<1x128xf32>
    %187 = vector.broadcast %186 : vector<1x128xf32> to vector<8x128xf32>
    %188 = arith.mulf %177, %187 : vector<8x128xf32>
    %189 = vector.broadcast %5 : vector<1x128xf32> to vector<8x128xf32>
    %190 = arith.addf %188, %189 : vector<8x128xf32>
    %cst_88 = arith.constant 1.000000e+00 : f32
    %191 = vector.broadcast %cst_88 : f32 to vector<8x128xf32>
    %192 = arith.cmpf ogt, %140, %191 : vector<8x128xf32>
    %cst_89 = arith.constant 1.000000e+00 : f32
    %cst_90 = arith.constant 0.000000e+00 : f32
    %193 = vector.broadcast %cst_89 : f32 to vector<8x128xf32>
    %194 = vector.broadcast %cst_90 : f32 to vector<8x128xf32>
    %195 = arith.select %192, %193, %194 : vector<8x128xi1>, vector<8x128xf32>
    %cst_91 = arith.constant 0.899999976 : f32
    %196 = vector.broadcast %cst_91 : f32 to vector<8x128xf32>
    %197 = arith.mulf %196, %140 : vector<8x128xf32>
    %198 = arith.addf %197, %190 : vector<8x128xf32>
    %199 = arith.subf %198, %195 : vector<8x128xf32>
    %cst_92 = arith.constant 1.000000e+00 : f32
    %200 = vector.broadcast %cst_92 : f32 to vector<8x128xf32>
    %201 = arith.cmpf ogt, %199, %200 : vector<8x128xf32>
    %cst_93 = arith.constant 1.000000e+00 : f32
    %cst_94 = arith.constant 0.000000e+00 : f32
    %202 = vector.broadcast %cst_93 : f32 to vector<8x128xf32>
    %203 = vector.broadcast %cst_94 : f32 to vector<8x128xf32>
    %204 = arith.select %201, %202, %203 : vector<8x128xi1>, vector<8x128xf32>
    %205 = arith.truncf %204 : vector<8x128xf32> to vector<8x128xbf16>
    %206 = arith.index_cast %c2_i32 : i32 to index
    %c0_95 = arith.constant 0 : index
    %c0_96 = arith.constant 0 : index
    %207 = vector.load %arg8[%206, %c0_95, %c0_96] : memref<8x8x128xbf16, #tpu.memory_space<vmem>>, vector<1x8x128xbf16>
    %208 = vector.shape_cast %207 : vector<1x8x128xbf16> to vector<8x128xbf16>
    %209 = vector.shape_cast %205 : vector<8x128xbf16> to vector<1x8x128xbf16>
    tpu.vector_store %arg8[%206, %c0_95, %c0_96], %209 {strides = array<i32>} : memref<8x8x128xbf16, #tpu.memory_space<vmem>>, vector<1x8x128xbf16>,
    %210 = arith.index_cast %c2_i32 : i32 to index
    %c0_97 = arith.constant 0 : index
    %c0_98 = arith.constant 0 : index
    %211 = vector.load %arg9[%210, %c0_97, %c0_98] : memref<8x8x128xf32, #tpu.memory_space<vmem>>, vector<1x8x128xf32>
    %212 = vector.shape_cast %211 : vector<1x8x128xf32> to vector<8x128xf32>
    %213 = vector.shape_cast %199 : vector<8x128xf32> to vector<1x8x128xf32>
    tpu.vector_store %arg9[%210, %c0_97, %c0_98], %213 {strides = array<i32>} : memref<8x8x128xf32, #tpu.memory_space<vmem>>, vector<1x8x128xf32>,
    %c3_i32 = arith.constant 3 : i32
    %214 = arith.index_cast %c3_i32 : i32 to index
    %c0_99 = arith.constant 0 : index
    %c0_100 = arith.constant 0 : index
    %215 = vector.load %arg12[%214, %c0_99, %c0_100] : memref<8x8x128xf32, #tpu.memory_space<vmem>>, vector<1x8x128xf32>
    %216 = vector.shape_cast %215 : vector<1x8x128xf32> to vector<8x128xf32>
    %cst_101 = arith.constant 1.000000e+00 : f32
    %217 = vector.broadcast %cst_101 : f32 to vector<8x128xf32>
    %218 = arith.cmpf ogt, %166, %217 : vector<8x128xf32>
    %cst_102 = arith.constant 1.000000e+00 : f32
    %cst_103 = arith.constant 0.000000e+00 : f32
    %219 = vector.broadcast %cst_102 : f32 to vector<8x128xf32>
    %220 = vector.broadcast %cst_103 : f32 to vector<8x128xf32>
    %221 = arith.select %218, %219, %220 : vector<8x128xi1>, vector<8x128xf32>
    %cst_104 = arith.constant 0.899999976 : f32
    %222 = vector.broadcast %cst_104 : f32 to vector<8x128xf32>
    %223 = arith.mulf %222, %166 : vector<8x128xf32>
    %224 = arith.addf %223, %216 : vector<8x128xf32>
    %225 = arith.subf %224, %221 : vector<8x128xf32>
    %cst_105 = arith.constant 1.000000e+00 : f32
    %226 = vector.broadcast %cst_105 : f32 to vector<8x128xf32>
    %227 = arith.cmpf ogt, %225, %226 : vector<8x128xf32>
    %228 = arith.extui %227 : vector<8x128xi1> to vector<8x128xi32>
    %229 = arith.sitofp %228 : vector<8x128xi32> to vector<8x128xf32>
    %cst_106 = arith.constant dense<0.000000e+00> : vector<8x128xf32>
    %230 = tpu.matmul %229, %3, %cst_106 {dimension_numbers = #tpu.dot_dimension_numbers<[1], [0], [0], [1], [0, 0, 1, 1], [], []>} : vector<8x128xf32>, vector<128x128xf32>, vector<8x128xf32> -> vector<8x128xf32>
    %cst_107 = arith.constant dense<0.000000e+00> : vector<128xf32>
    %231 = vector.multi_reduction <add>, %230, %cst_107 [0] : vector<8x128xf32> to vector<128xf32>
    %232 = vector.shape_cast %231 : vector<128xf32> to vector<1x128xf32>
    %cst_108 = arith.constant 8.000000e+00 : f32
    %233 = vector.broadcast %cst_108 : f32 to vector<1x128xf32>
    %234 = arith.divf %232, %233 : vector<1x128xf32>
    %235 = vector.broadcast %234 : vector<1x128xf32> to vector<8x128xf32>
    %236 = arith.subf %230, %235 : vector<8x128xf32>
    %237 = arith.mulf %236, %236 : vector<8x128xf32>
    %cst_109 = arith.constant dense<0.000000e+00> : vector<128xf32>
    %238 = vector.multi_reduction <add>, %237, %cst_109 [0] : vector<8x128xf32> to vector<128xf32>
    %239 = vector.shape_cast %238 : vector<128xf32> to vector<1x128xf32>
    %cst_110 = arith.constant 8.000000e+00 : f32
    %240 = vector.broadcast %cst_110 : f32 to vector<1x128xf32>
    %241 = arith.divf %239, %240 : vector<1x128xf32>
    %cst_111 = arith.constant 9.99999974E-6 : f32
    %242 = vector.broadcast %cst_111 : f32 to vector<1x128xf32>
    %243 = arith.addf %241, %242 : vector<1x128xf32>
    %244 = math.rsqrt %243 : vector<1x128xf32>
    %245 = arith.mulf %4, %244 : vector<1x128xf32>
    %246 = vector.broadcast %245 : vector<1x128xf32> to vector<8x128xf32>
    %247 = arith.mulf %236, %246 : vector<8x128xf32>
    %248 = vector.broadcast %5 : vector<1x128xf32> to vector<8x128xf32>
    %249 = arith.addf %247, %248 : vector<8x128xf32>
    %cst_112 = arith.constant 1.000000e+00 : f32
    %250 = vector.broadcast %cst_112 : f32 to vector<8x128xf32>
    %251 = arith.cmpf ogt, %199, %250 : vector<8x128xf32>
    %cst_113 = arith.constant 1.000000e+00 : f32
    %cst_114 = arith.constant 0.000000e+00 : f32
    %252 = vector.broadcast %cst_113 : f32 to vector<8x128xf32>
    %253 = vector.broadcast %cst_114 : f32 to vector<8x128xf32>
    %254 = arith.select %251, %252, %253 : vector<8x128xi1>, vector<8x128xf32>
    %cst_115 = arith.constant 0.899999976 : f32
    %255 = vector.broadcast %cst_115 : f32 to vector<8x128xf32>
    %256 = arith.mulf %255, %199 : vector<8x128xf32>
    %257 = arith.addf %256, %249 : vector<8x128xf32>
    %258 = arith.subf %257, %254 : vector<8x128xf32>
    %cst_116 = arith.constant 1.000000e+00 : f32
    %259 = vector.broadcast %cst_116 : f32 to vector<8x128xf32>
    %260 = arith.cmpf ogt, %258, %259 : vector<8x128xf32>
    %cst_117 = arith.constant 1.000000e+00 : f32
    %cst_118 = arith.constant 0.000000e+00 : f32
    %261 = vector.broadcast %cst_117 : f32 to vector<8x128xf32>
    %262 = vector.broadcast %cst_118 : f32 to vector<8x128xf32>
    %263 = arith.select %260, %261, %262 : vector<8x128xi1>, vector<8x128xf32>
    %264 = arith.truncf %263 : vector<8x128xf32> to vector<8x128xbf16>
    %265 = arith.index_cast %c3_i32 : i32 to index
    %c0_119 = arith.constant 0 : index
    %c0_120 = arith.constant 0 : index
    %266 = vector.load %arg8[%265, %c0_119, %c0_120] : memref<8x8x128xbf16, #tpu.memory_space<vmem>>, vector<1x8x128xbf16>
    %267 = vector.shape_cast %266 : vector<1x8x128xbf16> to vector<8x128xbf16>
    %268 = vector.shape_cast %264 : vector<8x128xbf16> to vector<1x8x128xbf16>
    tpu.vector_store %arg8[%265, %c0_119, %c0_120], %268 {strides = array<i32>} : memref<8x8x128xbf16, #tpu.memory_space<vmem>>, vector<1x8x128xbf16>,
    %269 = arith.index_cast %c3_i32 : i32 to index
    %c0_121 = arith.constant 0 : index
    %c0_122 = arith.constant 0 : index
    %270 = vector.load %arg9[%269, %c0_121, %c0_122] : memref<8x8x128xf32, #tpu.memory_space<vmem>>, vector<1x8x128xf32>
    %271 = vector.shape_cast %270 : vector<1x8x128xf32> to vector<8x128xf32>
    %272 = vector.shape_cast %258 : vector<8x128xf32> to vector<1x8x128xf32>
    tpu.vector_store %arg9[%269, %c0_121, %c0_122], %272 {strides = array<i32>} : memref<8x8x128xf32, #tpu.memory_space<vmem>>, vector<1x8x128xf32>,
    %c4_i32 = arith.constant 4 : i32
    %273 = arith.index_cast %c4_i32 : i32 to index
    %c0_123 = arith.constant 0 : index
    %c0_124 = arith.constant 0 : index
    %274 = vector.load %arg12[%273, %c0_123, %c0_124] : memref<8x8x128xf32, #tpu.memory_space<vmem>>, vector<1x8x128xf32>
    %275 = vector.shape_cast %274 : vector<1x8x128xf32> to vector<8x128xf32>
    %cst_125 = arith.constant 1.000000e+00 : f32
    %276 = vector.broadcast %cst_125 : f32 to vector<8x128xf32>
    %277 = arith.cmpf ogt, %225, %276 : vector<8x128xf32>
    %cst_126 = arith.constant 1.000000e+00 : f32
    %cst_127 = arith.constant 0.000000e+00 : f32
    %278 = vector.broadcast %cst_126 : f32 to vector<8x128xf32>
    %279 = vector.broadcast %cst_127 : f32 to vector<8x128xf32>
    %280 = arith.select %277, %278, %279 : vector<8x128xi1>, vector<8x128xf32>
    %cst_128 = arith.constant 0.899999976 : f32
    %281 = vector.broadcast %cst_128 : f32 to vector<8x128xf32>
    %282 = arith.mulf %281, %225 : vector<8x128xf32>
    %283 = arith.addf %282, %275 : vector<8x128xf32>
    %284 = arith.subf %283, %280 : vector<8x128xf32>
    %cst_129 = arith.constant 1.000000e+00 : f32
    %285 = vector.broadcast %cst_129 : f32 to vector<8x128xf32>
    %286 = arith.cmpf ogt, %284, %285 : vector<8x128xf32>
    %287 = arith.extui %286 : vector<8x128xi1> to vector<8x128xi32>
    %288 = arith.sitofp %287 : vector<8x128xi32> to vector<8x128xf32>
    %cst_130 = arith.constant dense<0.000000e+00> : vector<8x128xf32>
    %289 = tpu.matmul %288, %3, %cst_130 {dimension_numbers = #tpu.dot_dimension_numbers<[1], [0], [0], [1], [0, 0, 1, 1], [], []>} : vector<8x128xf32>, vector<128x128xf32>, vector<8x128xf32> -> vector<8x128xf32>
    %cst_131 = arith.constant dense<0.000000e+00> : vector<128xf32>
    %290 = vector.multi_reduction <add>, %289, %cst_131 [0] : vector<8x128xf32> to vector<128xf32>
    %291 = vector.shape_cast %290 : vector<128xf32> to vector<1x128xf32>
    %cst_132 = arith.constant 8.000000e+00 : f32
    %292 = vector.broadcast %cst_132 : f32 to vector<1x128xf32>
    %293 = arith.divf %291, %292 : vector<1x128xf32>
    %294 = vector.broadcast %293 : vector<1x128xf32> to vector<8x128xf32>
    %295 = arith.subf %289, %294 : vector<8x128xf32>
    %296 = arith.mulf %295, %295 : vector<8x128xf32>
    %cst_133 = arith.constant dense<0.000000e+00> : vector<128xf32>
    %297 = vector.multi_reduction <add>, %296, %cst_133 [0] : vector<8x128xf32> to vector<128xf32>
    %298 = vector.shape_cast %297 : vector<128xf32> to vector<1x128xf32>
    %cst_134 = arith.constant 8.000000e+00 : f32
    %299 = vector.broadcast %cst_134 : f32 to vector<1x128xf32>
    %300 = arith.divf %298, %299 : vector<1x128xf32>
    %cst_135 = arith.constant 9.99999974E-6 : f32
    %301 = vector.broadcast %cst_135 : f32 to vector<1x128xf32>
    %302 = arith.addf %300, %301 : vector<1x128xf32>
    %303 = math.rsqrt %302 : vector<1x128xf32>
    %304 = arith.mulf %4, %303 : vector<1x128xf32>
    %305 = vector.broadcast %304 : vector<1x128xf32> to vector<8x128xf32>
    %306 = arith.mulf %295, %305 : vector<8x128xf32>
    %307 = vector.broadcast %5 : vector<1x128xf32> to vector<8x128xf32>
    %308 = arith.addf %306, %307 : vector<8x128xf32>
    %cst_136 = arith.constant 1.000000e+00 : f32
    %309 = vector.broadcast %cst_136 : f32 to vector<8x128xf32>
    %310 = arith.cmpf ogt, %258, %309 : vector<8x128xf32>
    %cst_137 = arith.constant 1.000000e+00 : f32
    %cst_138 = arith.constant 0.000000e+00 : f32
    %311 = vector.broadcast %cst_137 : f32 to vector<8x128xf32>
    %312 = vector.broadcast %cst_138 : f32 to vector<8x128xf32>
    %313 = arith.select %310, %311, %312 : vector<8x128xi1>, vector<8x128xf32>
    %cst_139 = arith.constant 0.899999976 : f32
    %314 = vector.broadcast %cst_139 : f32 to vector<8x128xf32>
    %315 = arith.mulf %314, %258 : vector<8x128xf32>
    %316 = arith.addf %315, %308 : vector<8x128xf32>
    %317 = arith.subf %316, %313 : vector<8x128xf32>
    %cst_140 = arith.constant 1.000000e+00 : f32
    %318 = vector.broadcast %cst_140 : f32 to vector<8x128xf32>
    %319 = arith.cmpf ogt, %317, %318 : vector<8x128xf32>
    %cst_141 = arith.constant 1.000000e+00 : f32
    %cst_142 = arith.constant 0.000000e+00 : f32
    %320 = vector.broadcast %cst_141 : f32 to vector<8x128xf32>
    %321 = vector.broadcast %cst_142 : f32 to vector<8x128xf32>
    %322 = arith.select %319, %320, %321 : vector<8x128xi1>, vector<8x128xf32>
    %323 = arith.truncf %322 : vector<8x128xf32> to vector<8x128xbf16>
    %324 = arith.index_cast %c4_i32 : i32 to index
    %c0_143 = arith.constant 0 : index
    %c0_144 = arith.constant 0 : index
    %325 = vector.load %arg8[%324, %c0_143, %c0_144] : memref<8x8x128xbf16, #tpu.memory_space<vmem>>, vector<1x8x128xbf16>
    %326 = vector.shape_cast %325 : vector<1x8x128xbf16> to vector<8x128xbf16>
    %327 = vector.shape_cast %323 : vector<8x128xbf16> to vector<1x8x128xbf16>
    tpu.vector_store %arg8[%324, %c0_143, %c0_144], %327 {strides = array<i32>} : memref<8x8x128xbf16, #tpu.memory_space<vmem>>, vector<1x8x128xbf16>,
    %328 = arith.index_cast %c4_i32 : i32 to index
    %c0_145 = arith.constant 0 : index
    %c0_146 = arith.constant 0 : index
    %329 = vector.load %arg9[%328, %c0_145, %c0_146] : memref<8x8x128xf32, #tpu.memory_space<vmem>>, vector<1x8x128xf32>
    %330 = vector.shape_cast %329 : vector<1x8x128xf32> to vector<8x128xf32>
    %331 = vector.shape_cast %317 : vector<8x128xf32> to vector<1x8x128xf32>
    tpu.vector_store %arg9[%328, %c0_145, %c0_146], %331 {strides = array<i32>} : memref<8x8x128xf32, #tpu.memory_space<vmem>>, vector<1x8x128xf32>,
    %c5_i32 = arith.constant 5 : i32
    %332 = arith.index_cast %c5_i32 : i32 to index
    %c0_147 = arith.constant 0 : index
    %c0_148 = arith.constant 0 : index
    %333 = vector.load %arg12[%332, %c0_147, %c0_148] : memref<8x8x128xf32, #tpu.memory_space<vmem>>, vector<1x8x128xf32>
    %334 = vector.shape_cast %333 : vector<1x8x128xf32> to vector<8x128xf32>
    %cst_149 = arith.constant 1.000000e+00 : f32
    %335 = vector.broadcast %cst_149 : f32 to vector<8x128xf32>
    %336 = arith.cmpf ogt, %284, %335 : vector<8x128xf32>
    %cst_150 = arith.constant 1.000000e+00 : f32
    %cst_151 = arith.constant 0.000000e+00 : f32
    %337 = vector.broadcast %cst_150 : f32 to vector<8x128xf32>
    %338 = vector.broadcast %cst_151 : f32 to vector<8x128xf32>
    %339 = arith.select %336, %337, %338 : vector<8x128xi1>, vector<8x128xf32>
    %cst_152 = arith.constant 0.899999976 : f32
    %340 = vector.broadcast %cst_152 : f32 to vector<8x128xf32>
    %341 = arith.mulf %340, %284 : vector<8x128xf32>
    %342 = arith.addf %341, %334 : vector<8x128xf32>
    %343 = arith.subf %342, %339 : vector<8x128xf32>
    %cst_153 = arith.constant 1.000000e+00 : f32
    %344 = vector.broadcast %cst_153 : f32 to vector<8x128xf32>
    %345 = arith.cmpf ogt, %343, %344 : vector<8x128xf32>
    %346 = arith.extui %345 : vector<8x128xi1> to vector<8x128xi32>
    %347 = arith.sitofp %346 : vector<8x128xi32> to vector<8x128xf32>
    %cst_154 = arith.constant dense<0.000000e+00> : vector<8x128xf32>
    %348 = tpu.matmul %347, %3, %cst_154 {dimension_numbers = #tpu.dot_dimension_numbers<[1], [0], [0], [1], [0, 0, 1, 1], [], []>} : vector<8x128xf32>, vector<128x128xf32>, vector<8x128xf32> -> vector<8x128xf32>
    %cst_155 = arith.constant dense<0.000000e+00> : vector<128xf32>
    %349 = vector.multi_reduction <add>, %348, %cst_155 [0] : vector<8x128xf32> to vector<128xf32>
    %350 = vector.shape_cast %349 : vector<128xf32> to vector<1x128xf32>
    %cst_156 = arith.constant 8.000000e+00 : f32
    %351 = vector.broadcast %cst_156 : f32 to vector<1x128xf32>
    %352 = arith.divf %350, %351 : vector<1x128xf32>
    %353 = vector.broadcast %352 : vector<1x128xf32> to vector<8x128xf32>
    %354 = arith.subf %348, %353 : vector<8x128xf32>
    %355 = arith.mulf %354, %354 : vector<8x128xf32>
    %cst_157 = arith.constant dense<0.000000e+00> : vector<128xf32>
    %356 = vector.multi_reduction <add>, %355, %cst_157 [0] : vector<8x128xf32> to vector<128xf32>
    %357 = vector.shape_cast %356 : vector<128xf32> to vector<1x128xf32>
    %cst_158 = arith.constant 8.000000e+00 : f32
    %358 = vector.broadcast %cst_158 : f32 to vector<1x128xf32>
    %359 = arith.divf %357, %358 : vector<1x128xf32>
    %cst_159 = arith.constant 9.99999974E-6 : f32
    %360 = vector.broadcast %cst_159 : f32 to vector<1x128xf32>
    %361 = arith.addf %359, %360 : vector<1x128xf32>
    %362 = math.rsqrt %361 : vector<1x128xf32>
    %363 = arith.mulf %4, %362 : vector<1x128xf32>
    %364 = vector.broadcast %363 : vector<1x128xf32> to vector<8x128xf32>
    %365 = arith.mulf %354, %364 : vector<8x128xf32>
    %366 = vector.broadcast %5 : vector<1x128xf32> to vector<8x128xf32>
    %367 = arith.addf %365, %366 : vector<8x128xf32>
    %cst_160 = arith.constant 1.000000e+00 : f32
    %368 = vector.broadcast %cst_160 : f32 to vector<8x128xf32>
    %369 = arith.cmpf ogt, %317, %368 : vector<8x128xf32>
    %cst_161 = arith.constant 1.000000e+00 : f32
    %cst_162 = arith.constant 0.000000e+00 : f32
    %370 = vector.broadcast %cst_161 : f32 to vector<8x128xf32>
    %371 = vector.broadcast %cst_162 : f32 to vector<8x128xf32>
    %372 = arith.select %369, %370, %371 : vector<8x128xi1>, vector<8x128xf32>
    %cst_163 = arith.constant 0.899999976 : f32
    %373 = vector.broadcast %cst_163 : f32 to vector<8x128xf32>
    %374 = arith.mulf %373, %317 : vector<8x128xf32>
    %375 = arith.addf %374, %367 : vector<8x128xf32>
    %376 = arith.subf %375, %372 : vector<8x128xf32>
    %cst_164 = arith.constant 1.000000e+00 : f32
    %377 = vector.broadcast %cst_164 : f32 to vector<8x128xf32>
    %378 = arith.cmpf ogt, %376, %377 : vector<8x128xf32>
    %cst_165 = arith.constant 1.000000e+00 : f32
    %cst_166 = arith.constant 0.000000e+00 : f32
    %379 = vector.broadcast %cst_165 : f32 to vector<8x128xf32>
    %380 = vector.broadcast %cst_166 : f32 to vector<8x128xf32>
    %381 = arith.select %378, %379, %380 : vector<8x128xi1>, vector<8x128xf32>
    %382 = arith.truncf %381 : vector<8x128xf32> to vector<8x128xbf16>
    %383 = arith.index_cast %c5_i32 : i32 to index
    %c0_167 = arith.constant 0 : index
    %c0_168 = arith.constant 0 : index
    %384 = vector.load %arg8[%383, %c0_167, %c0_168] : memref<8x8x128xbf16, #tpu.memory_space<vmem>>, vector<1x8x128xbf16>
    %385 = vector.shape_cast %384 : vector<1x8x128xbf16> to vector<8x128xbf16>
    %386 = vector.shape_cast %382 : vector<8x128xbf16> to vector<1x8x128xbf16>
    tpu.vector_store %arg8[%383, %c0_167, %c0_168], %386 {strides = array<i32>} : memref<8x8x128xbf16, #tpu.memory_space<vmem>>, vector<1x8x128xbf16>,
    %387 = arith.index_cast %c5_i32 : i32 to index
    %c0_169 = arith.constant 0 : index
    %c0_170 = arith.constant 0 : index
    %388 = vector.load %arg9[%387, %c0_169, %c0_170] : memref<8x8x128xf32, #tpu.memory_space<vmem>>, vector<1x8x128xf32>
    %389 = vector.shape_cast %388 : vector<1x8x128xf32> to vector<8x128xf32>
    %390 = vector.shape_cast %376 : vector<8x128xf32> to vector<1x8x128xf32>
    tpu.vector_store %arg9[%387, %c0_169, %c0_170], %390 {strides = array<i32>} : memref<8x8x128xf32, #tpu.memory_space<vmem>>, vector<1x8x128xf32>,
    %c6_i32 = arith.constant 6 : i32
    %391 = arith.index_cast %c6_i32 : i32 to index
    %c0_171 = arith.constant 0 : index
    %c0_172 = arith.constant 0 : index
    %392 = vector.load %arg12[%391, %c0_171, %c0_172] : memref<8x8x128xf32, #tpu.memory_space<vmem>>, vector<1x8x128xf32>
    %393 = vector.shape_cast %392 : vector<1x8x128xf32> to vector<8x128xf32>
    %cst_173 = arith.constant 1.000000e+00 : f32
    %394 = vector.broadcast %cst_173 : f32 to vector<8x128xf32>
    %395 = arith.cmpf ogt, %343, %394 : vector<8x128xf32>
    %cst_174 = arith.constant 1.000000e+00 : f32
    %cst_175 = arith.constant 0.000000e+00 : f32
    %396 = vector.broadcast %cst_174 : f32 to vector<8x128xf32>
    %397 = vector.broadcast %cst_175 : f32 to vector<8x128xf32>
    %398 = arith.select %395, %396, %397 : vector<8x128xi1>, vector<8x128xf32>
    %cst_176 = arith.constant 0.899999976 : f32
    %399 = vector.broadcast %cst_176 : f32 to vector<8x128xf32>
    %400 = arith.mulf %399, %343 : vector<8x128xf32>
    %401 = arith.addf %400, %393 : vector<8x128xf32>
    %402 = arith.subf %401, %398 : vector<8x128xf32>
    %cst_177 = arith.constant 1.000000e+00 : f32
    %403 = vector.broadcast %cst_177 : f32 to vector<8x128xf32>
    %404 = arith.cmpf ogt, %402, %403 : vector<8x128xf32>
    %405 = arith.extui %404 : vector<8x128xi1> to vector<8x128xi32>
    %406 = arith.sitofp %405 : vector<8x128xi32> to vector<8x128xf32>
    %cst_178 = arith.constant dense<0.000000e+00> : vector<8x128xf32>
    %407 = tpu.matmul %406, %3, %cst_178 {dimension_numbers = #tpu.dot_dimension_numbers<[1], [0], [0], [1], [0, 0, 1, 1], [], []>} : vector<8x128xf32>, vector<128x128xf32>, vector<8x128xf32> -> vector<8x128xf32>
    %cst_179 = arith.constant dense<0.000000e+00> : vector<128xf32>
    %408 = vector.multi_reduction <add>, %407, %cst_179 [0] : vector<8x128xf32> to vector<128xf32>
    %409 = vector.shape_cast %408 : vector<128xf32> to vector<1x128xf32>
    %cst_180 = arith.constant 8.000000e+00 : f32
    %410 = vector.broadcast %cst_180 : f32 to vector<1x128xf32>
    %411 = arith.divf %409, %410 : vector<1x128xf32>
    %412 = vector.broadcast %411 : vector<1x128xf32> to vector<8x128xf32>
    %413 = arith.subf %407, %412 : vector<8x128xf32>
    %414 = arith.mulf %413, %413 : vector<8x128xf32>
    %cst_181 = arith.constant dense<0.000000e+00> : vector<128xf32>
    %415 = vector.multi_reduction <add>, %414, %cst_181 [0] : vector<8x128xf32> to vector<128xf32>
    %416 = vector.shape_cast %415 : vector<128xf32> to vector<1x128xf32>
    %cst_182 = arith.constant 8.000000e+00 : f32
    %417 = vector.broadcast %cst_182 : f32 to vector<1x128xf32>
    %418 = arith.divf %416, %417 : vector<1x128xf32>
    %cst_183 = arith.constant 9.99999974E-6 : f32
    %419 = vector.broadcast %cst_183 : f32 to vector<1x128xf32>
    %420 = arith.addf %418, %419 : vector<1x128xf32>
    %421 = math.rsqrt %420 : vector<1x128xf32>
    %422 = arith.mulf %4, %421 : vector<1x128xf32>
    %423 = vector.broadcast %422 : vector<1x128xf32> to vector<8x128xf32>
    %424 = arith.mulf %413, %423 : vector<8x128xf32>
    %425 = vector.broadcast %5 : vector<1x128xf32> to vector<8x128xf32>
    %426 = arith.addf %424, %425 : vector<8x128xf32>
    %cst_184 = arith.constant 1.000000e+00 : f32
    %427 = vector.broadcast %cst_184 : f32 to vector<8x128xf32>
    %428 = arith.cmpf ogt, %376, %427 : vector<8x128xf32>
    %cst_185 = arith.constant 1.000000e+00 : f32
    %cst_186 = arith.constant 0.000000e+00 : f32
    %429 = vector.broadcast %cst_185 : f32 to vector<8x128xf32>
    %430 = vector.broadcast %cst_186 : f32 to vector<8x128xf32>
    %431 = arith.select %428, %429, %430 : vector<8x128xi1>, vector<8x128xf32>
    %cst_187 = arith.constant 0.899999976 : f32
    %432 = vector.broadcast %cst_187 : f32 to vector<8x128xf32>
    %433 = arith.mulf %432, %376 : vector<8x128xf32>
    %434 = arith.addf %433, %426 : vector<8x128xf32>
    %435 = arith.subf %434, %431 : vector<8x128xf32>
    %cst_188 = arith.constant 1.000000e+00 : f32
    %436 = vector.broadcast %cst_188 : f32 to vector<8x128xf32>
    %437 = arith.cmpf ogt, %435, %436 : vector<8x128xf32>
    %cst_189 = arith.constant 1.000000e+00 : f32
    %cst_190 = arith.constant 0.000000e+00 : f32
    %438 = vector.broadcast %cst_189 : f32 to vector<8x128xf32>
    %439 = vector.broadcast %cst_190 : f32 to vector<8x128xf32>
    %440 = arith.select %437, %438, %439 : vector<8x128xi1>, vector<8x128xf32>
    %441 = arith.truncf %440 : vector<8x128xf32> to vector<8x128xbf16>
    %442 = arith.index_cast %c6_i32 : i32 to index
    %c0_191 = arith.constant 0 : index
    %c0_192 = arith.constant 0 : index
    %443 = vector.load %arg8[%442, %c0_191, %c0_192] : memref<8x8x128xbf16, #tpu.memory_space<vmem>>, vector<1x8x128xbf16>
    %444 = vector.shape_cast %443 : vector<1x8x128xbf16> to vector<8x128xbf16>
    %445 = vector.shape_cast %441 : vector<8x128xbf16> to vector<1x8x128xbf16>
    tpu.vector_store %arg8[%442, %c0_191, %c0_192], %445 {strides = array<i32>} : memref<8x8x128xbf16, #tpu.memory_space<vmem>>, vector<1x8x128xbf16>,
    %446 = arith.index_cast %c6_i32 : i32 to index
    %c0_193 = arith.constant 0 : index
    %c0_194 = arith.constant 0 : index
    %447 = vector.load %arg9[%446, %c0_193, %c0_194] : memref<8x8x128xf32, #tpu.memory_space<vmem>>, vector<1x8x128xf32>
    %448 = vector.shape_cast %447 : vector<1x8x128xf32> to vector<8x128xf32>
    %449 = vector.shape_cast %435 : vector<8x128xf32> to vector<1x8x128xf32>
    tpu.vector_store %arg9[%446, %c0_193, %c0_194], %449 {strides = array<i32>} : memref<8x8x128xf32, #tpu.memory_space<vmem>>, vector<1x8x128xf32>,
    %c7_i32 = arith.constant 7 : i32
    %450 = arith.index_cast %c7_i32 : i32 to index
    %c0_195 = arith.constant 0 : index
    %c0_196 = arith.constant 0 : index
    %451 = vector.load %arg12[%450, %c0_195, %c0_196] : memref<8x8x128xf32, #tpu.memory_space<vmem>>, vector<1x8x128xf32>
    %452 = vector.shape_cast %451 : vector<1x8x128xf32> to vector<8x128xf32>
    %cst_197 = arith.constant 1.000000e+00 : f32
    %453 = vector.broadcast %cst_197 : f32 to vector<8x128xf32>
    %454 = arith.cmpf ogt, %402, %453 : vector<8x128xf32>
    %cst_198 = arith.constant 1.000000e+00 : f32
    %cst_199 = arith.constant 0.000000e+00 : f32
    %455 = vector.broadcast %cst_198 : f32 to vector<8x128xf32>
    %456 = vector.broadcast %cst_199 : f32 to vector<8x128xf32>
    %457 = arith.select %454, %455, %456 : vector<8x128xi1>, vector<8x128xf32>
    %cst_200 = arith.constant 0.899999976 : f32
    %458 = vector.broadcast %cst_200 : f32 to vector<8x128xf32>
    %459 = arith.mulf %458, %402 : vector<8x128xf32>
    %460 = arith.addf %459, %452 : vector<8x128xf32>
    %461 = arith.subf %460, %457 : vector<8x128xf32>
    %cst_201 = arith.constant 1.000000e+00 : f32
    %462 = vector.broadcast %cst_201 : f32 to vector<8x128xf32>
    %463 = arith.cmpf ogt, %461, %462 : vector<8x128xf32>
    %464 = arith.extui %463 : vector<8x128xi1> to vector<8x128xi32>
    %465 = arith.sitofp %464 : vector<8x128xi32> to vector<8x128xf32>
    %cst_202 = arith.constant dense<0.000000e+00> : vector<8x128xf32>
    %466 = tpu.matmul %465, %3, %cst_202 {dimension_numbers = #tpu.dot_dimension_numbers<[1], [0], [0], [1], [0, 0, 1, 1], [], []>} : vector<8x128xf32>, vector<128x128xf32>, vector<8x128xf32> -> vector<8x128xf32>
    %cst_203 = arith.constant dense<0.000000e+00> : vector<128xf32>
    %467 = vector.multi_reduction <add>, %466, %cst_203 [0] : vector<8x128xf32> to vector<128xf32>
    %468 = vector.shape_cast %467 : vector<128xf32> to vector<1x128xf32>
    %cst_204 = arith.constant 8.000000e+00 : f32
    %469 = vector.broadcast %cst_204 : f32 to vector<1x128xf32>
    %470 = arith.divf %468, %469 : vector<1x128xf32>
    %471 = vector.broadcast %470 : vector<1x128xf32> to vector<8x128xf32>
    %472 = arith.subf %466, %471 : vector<8x128xf32>
    %473 = arith.mulf %472, %472 : vector<8x128xf32>
    %cst_205 = arith.constant dense<0.000000e+00> : vector<128xf32>
    %474 = vector.multi_reduction <add>, %473, %cst_205 [0] : vector<8x128xf32> to vector<128xf32>
    %475 = vector.shape_cast %474 : vector<128xf32> to vector<1x128xf32>
    %cst_206 = arith.constant 8.000000e+00 : f32
    %476 = vector.broadcast %cst_206 : f32 to vector<1x128xf32>
    %477 = arith.divf %475, %476 : vector<1x128xf32>
    %cst_207 = arith.constant 9.99999974E-6 : f32
    %478 = vector.broadcast %cst_207 : f32 to vector<1x128xf32>
    %479 = arith.addf %477, %478 : vector<1x128xf32>
    %480 = math.rsqrt %479 : vector<1x128xf32>
    %481 = arith.mulf %4, %480 : vector<1x128xf32>
    %482 = vector.broadcast %481 : vector<1x128xf32> to vector<8x128xf32>
    %483 = arith.mulf %472, %482 : vector<8x128xf32>
    %484 = vector.broadcast %5 : vector<1x128xf32> to vector<8x128xf32>
    %485 = arith.addf %483, %484 : vector<8x128xf32>
    %cst_208 = arith.constant 1.000000e+00 : f32
    %486 = vector.broadcast %cst_208 : f32 to vector<8x128xf32>
    %487 = arith.cmpf ogt, %435, %486 : vector<8x128xf32>
    %cst_209 = arith.constant 1.000000e+00 : f32
    %cst_210 = arith.constant 0.000000e+00 : f32
    %488 = vector.broadcast %cst_209 : f32 to vector<8x128xf32>
    %489 = vector.broadcast %cst_210 : f32 to vector<8x128xf32>
    %490 = arith.select %487, %488, %489 : vector<8x128xi1>, vector<8x128xf32>
    %cst_211 = arith.constant 0.899999976 : f32
    %491 = vector.broadcast %cst_211 : f32 to vector<8x128xf32>
    %492 = arith.mulf %491, %435 : vector<8x128xf32>
    %493 = arith.addf %492, %485 : vector<8x128xf32>
    %494 = arith.subf %493, %490 : vector<8x128xf32>
    %cst_212 = arith.constant 1.000000e+00 : f32
    %495 = vector.broadcast %cst_212 : f32 to vector<8x128xf32>
    %496 = arith.cmpf ogt, %494, %495 : vector<8x128xf32>
    %cst_213 = arith.constant 1.000000e+00 : f32
    %cst_214 = arith.constant 0.000000e+00 : f32
    %497 = vector.broadcast %cst_213 : f32 to vector<8x128xf32>
    %498 = vector.broadcast %cst_214 : f32 to vector<8x128xf32>
    %499 = arith.select %496, %497, %498 : vector<8x128xi1>, vector<8x128xf32>
    %500 = arith.truncf %499 : vector<8x128xf32> to vector<8x128xbf16>
    %501 = arith.index_cast %c7_i32 : i32 to index
    %c0_215 = arith.constant 0 : index
    %c0_216 = arith.constant 0 : index
    %502 = vector.load %arg8[%501, %c0_215, %c0_216] : memref<8x8x128xbf16, #tpu.memory_space<vmem>>, vector<1x8x128xbf16>
    %503 = vector.shape_cast %502 : vector<1x8x128xbf16> to vector<8x128xbf16>
    %504 = vector.shape_cast %500 : vector<8x128xbf16> to vector<1x8x128xbf16>
    tpu.vector_store %arg8[%501, %c0_215, %c0_216], %504 {strides = array<i32>} : memref<8x8x128xbf16, #tpu.memory_space<vmem>>, vector<1x8x128xbf16>,
    %505 = arith.index_cast %c7_i32 : i32 to index
    %c0_217 = arith.constant 0 : index
    %c0_218 = arith.constant 0 : index
    %506 = vector.load %arg9[%505, %c0_217, %c0_218] : memref<8x8x128xf32, #tpu.memory_space<vmem>>, vector<1x8x128xf32>
    %507 = vector.shape_cast %506 : vector<1x8x128xf32> to vector<8x128xf32>
    %508 = vector.shape_cast %494 : vector<8x128xf32> to vector<1x8x128xf32>
    tpu.vector_store %arg9[%505, %c0_217, %c0_218], %508 {strides = array<i32>} : memref<8x8x128xf32, #tpu.memory_space<vmem>>, vector<1x8x128xf32>,
    %c8_i32 = arith.constant 8 : i32
    %c0_219 = arith.constant 0 : index
    %c0_220 = arith.constant 0 : index
    %509 = vector.load %arg10[%c0_219, %c0_220] : memref<8x128xf32, #tpu.memory_space<vmem>>, vector<8x128xf32>
    tpu.vector_store %arg10[%c0_219, %c0_220], %461 {strides = array<i32>} : memref<8x128xf32, #tpu.memory_space<vmem>>, vector<8x128xf32>,
    %c0_221 = arith.constant 0 : index
    %c0_222 = arith.constant 0 : index
    %510 = vector.load %arg11[%c0_221, %c0_222] : memref<8x128xf32, #tpu.memory_space<vmem>>, vector<8x128xf32>
    tpu.vector_store %arg11[%c0_221, %c0_222], %494 {strides = array<i32>} : memref<8x128xf32, #tpu.memory_space<vmem>>, vector<8x128xf32>,
    return
  }
  func.func @transform_0(%arg0: i32) -> (i32, i32) {
    %c0_i32 = arith.constant 0 : i32
    %c0_i32_0 = arith.constant 0 : i32
    return %arg0, %c0_i32 : i32, i32
  }
  func.func @transform_1(%arg0: i32) -> (i32, i32) {
    %c0_i32 = arith.constant 0 : i32
    %c0_i32_0 = arith.constant 0 : i32
    %c0_i32_1 = arith.constant 0 : i32
    return %c0_i32, %c0_i32_0 : i32, i32
  }
  func.func @transform_2(%arg0: i32) -> (i32, i32) {
    %c0_i32 = arith.constant 0 : i32
    %c0_i32_0 = arith.constant 0 : i32
    %c0_i32_1 = arith.constant 0 : i32
    return %c0_i32, %c0_i32_0 : i32, i32
  }
  func.func @transform_3(%arg0: i32) -> (i32, i32) {
    %c0_i32 = arith.constant 0 : i32
    %c0_i32_0 = arith.constant 0 : i32
    %c0_i32_1 = arith.constant 0 : i32
    return %c0_i32, %c0_i32_0 : i32, i32
  }
  func.func @transform_4(%arg0: i32) -> (i32, i32) {
    %c0_i32 = arith.constant 0 : i32
    %c0_i32_0 = arith.constant 0 : i32
    %c0_i32_1 = arith.constant 0 : i32
    return %c0_i32, %c0_i32_0 : i32, i32
  }
  func.func @transform_5(%arg0: i32) -> (i32, i32) {
    %c0_i32 = arith.constant 0 : i32
    %c0_i32_0 = arith.constant 0 : i32
    %c0_i32_1 = arith.constant 0 : i32
    return %c0_i32, %c0_i32_0 : i32, i32
  }
  func.func @transform_6(%arg0: i32) -> (i32, i32) {
    %c0_i32 = arith.constant 0 : i32
    %c0_i32_0 = arith.constant 0 : i32
    %c0_i32_1 = arith.constant 0 : i32
    return %c0_i32, %c0_i32_0 : i32, i32
  }
  func.func @transform_7(%arg0: i32) -> (i32, i32, i32) {
    %c0_i32 = arith.constant 0 : i32
    %c0_i32_0 = arith.constant 0 : i32
    %c0_i32_1 = arith.constant 0 : i32
    return %arg0, %c0_i32, %c0_i32_0 : i32, i32, i32
  }
  func.func @transform_8(%arg0: i32) -> (i32, i32, i32) {
    %c0_i32 = arith.constant 0 : i32
    %c0_i32_0 = arith.constant 0 : i32
    %c0_i32_1 = arith.constant 0 : i32
    return %arg0, %c0_i32, %c0_i32_0 : i32, i32, i32
  }
}

</mosaic_0001>

<bundles_post_ra>
// kernel: tpu_custom_call.1
= control target key start
LH: loop header
LB: loop body
LE: loop exit
PB: predicated region body
PF: predicated region fallthrough
CT: control target
= control target key end

     0   :  { %14 = vsyncpa [#allocation6], 0  ;;  %s2666_s0 = inlined_call_operand.vmem [shape: f32[64,16], index: 0, kind: input, shape index: {}]   ;;  %s2667_s1 = inlined_call_operand.vmem [shape: f32[16,128], index: 1, kind: input, shape index: {}]   ;;  %s2668_s2 = inlined_call_operand.vmem [shape: f32[1,128], index: 2, kind: input, shape index: {}]   ;;  %s2669_s3 = inlined_call_operand.vmem [shape: f32[1,128], index: 3, kind: input, shape index: {}]   ;;  %s2670_s4 = inlined_call_operand.hbm [shape: f32[128,128], index: 4, kind: input, shape index: {}]   ;;  %s2671_s5 = inlined_call_operand.vmem [shape: f32[1,128], index: 5, kind: input, shape index: {}]   ;;  %s2672_s6 = inlined_call_operand.vmem [shape: f32[1,128], index: 6, kind: input, shape index: {}]   ;;  %s2673_s7 = inlined_call_operand.hbm [shape: bf16[8,8,128], index: 7, kind: output, shape index: {0}]   ;;  %s2674_s8 = inlined_call_operand.hbm [shape: f32[8,8,128], index: 8, kind: output, shape index: {1}]  }
   0x1   :  { %15 = vsyncpa [#allocation7], 0 }
   0x2   :  { %16 = vsyncpa [#allocation10], 0  ;;  %s2191_s27 = smov [#allocation5]   ;;  %s2119_s9 = scalar_lea.hbm %s2670_s4, 2048 }
   0x3   :  { %s30_s28 = sshll.u32 %s2191_s27, 4  ;;  %p2120_p0 = scmp.ne.s32.totalorder %s2670_s4, %s2119_s9  ;;  %s31_s28 = int_to_ptr.vmem [resolvable:$true] %s30_s28 }
   0x4   :  { %p2123_p1 = scmp.lt.u32.totalorder %s2119_s9, %s2670_s4 }
   0x6   :  { %p2125_p2 = pnand %p2123_p1, %p2120_p0 }
   0x8   :  { %2128 = shalt.err (!%p2125_p2)
}
   0x9   :  { %s2129_s14 = scalar_lea.vmem %s31_s28, 2048  ;;  %p2134_p4 = scmp.lt.s32.totalorder %s31_s28, %s31_s28 }
   0xa   :  { %p2130_p3 = scmp.ne.s32.totalorder %s31_s28, %s2129_s14  ;;  %p2135_p5 = scmp.lt.s32.totalorder %s2129_s14, %s2129_s14 }
   0xc   :  { %p2136_p6 = por %p2135_p5, %p2134_p4 }
   0xe   :  { %p2137_p7 = pnand %p2136_p6, %p2130_p3 }
  0x10   :  { %2140 = shalt.err (!%p2137_p7)
}
  0x11   :  { %s2192_s15 = smov 128   ;;  %s2193_s16 = smov 8  }
  0x12   :  { %36 = dma.hbm_to_vmem [thread:$0]  %s2670_s4, 2048, %s31_s28, [#allocation6], %s2192_s15, %s2192_s15, %s2193_s16  }
  0x13   :  { %2185 = dma.done.wait [#allocation6], 2048  }
  0x14   :  { %2186 = vsyncadd [#allocation6], 4294965248  ;;  %vm78_vm0 = vcmask 130048   ;;  %v76_v0 = vld [vmem:[%s2667_s1] sm:$0xff]  ;;  %v77_v1 = vld [vmem:[%s2667_s1 + $0x8] sm:$0xff]  ;;  %v2194_v14 = vmov 0.0|0.0  }
  0x15   :  { %v68_v2 = vld [vmem:[%s2666_s0] sm:$0xff]  ;;  %v1880_v3 = vpack.c.bf16 %v77_v1, %v76_v0  ;;  %v69_v4 = vld [vmem:[%s2666_s0 + $0x8] sm:$0xff]  ;;  %v70_v5 = vld [vmem:[%s2666_s0 + $0x10] sm:$0xff]  ;;  %1884 = vmatprep.subr.bf16.mxu1 %v2194_v14  ;;  %vm2195_vm1 = vmmov 0   ;;  %v2196_v36 = vmov 0.0   ;;  %v370_v0 = vlaneseq  ;;  %s2199_s22 = smov [#allocation8]  }
  0x16   :  { %1588 = vmatprep.mubr.msk.f32.mxu0 %vm78_vm0, %v68_v2  ;;  %v71_v6 = vld [vmem:[%s2666_s0 + $0x18] sm:$0xff]  ;;  %v72_v7 = vld [vmem:[%s2666_s0 + $0x20] sm:$0xff]  ;;  %v73_v8 = vld [vmem:[%s2666_s0 + $0x28] sm:$0xff]  ;;  %1632 = vmatprep.mubr.msk.f32.mxu1 %vm2195_vm1, %v2196_v36  ;;  %s1384_s23 = sshll.u32 %s2199_s22, 4  ;;  %s2631_s23 = int_to_ptr.vmem [resolvable:$true] %s1384_s23 }
  0x17   :  { %1881 = vmatprep.subr.bf16.mxu0 %v1880_v3  ;;  %v74_v9 = vld [vmem:[%s2666_s0 + $0x30] sm:$0xff]  ;;  %v75_v10 = vld [vmem:[%s2666_s0 + $0x38] sm:$0xff]  ;;  %v50_v11 = vld [vmem:[#allocation5] sm:$0xff] }
  0x18   :  { %1883 = vmatpush3.bf16.msra.mxu0 %v1880_v3  ;;  %v51_v12 = vld [vmem:[#allocation5 + $0x8] sm:$0xff]  ;;  %v52_v15 = vld [vmem:[#allocation5 + $0x10] sm:$0xff]  ;;  %v53_v16 = vld [vmem:[#allocation5 + $0x18] sm:$0xff] }
  0x19   :  { %v2300_v13 = vpack.c.bf16 %v51_v12, %v50_v11  ;;  %1908 = vmatprep.subr.bf16.mxu0 %v2194_v14  ;;  %v2308_v17 = vpack.c.bf16 %v53_v16, %v52_v15  ;;  %v54_v18 = vld [vmem:[#allocation5 + $0x20] sm:$0xff]  ;;  %v55_v19 = vld [vmem:[#allocation5 + $0x28] sm:$0xff]  ;;  %v56_v21 = vld [vmem:[#allocation5 + $0x30] sm:$0xff] }
  0x1a   :  { %v2314_v20 = vpack.c.bf16 %v55_v19, %v54_v18  ;;  %v57_v22 = vld [vmem:[#allocation5 + $0x38] sm:$0xff]  ;;  %v58_v24 = vld [vmem:[#allocation5 + $0x40] sm:$0xff]  ;;  %v59_v25 = vld [vmem:[#allocation5 + $0x48] sm:$0xff] }
  0x1b   :  { %1589 = vmatmul.mubr.msk.f32.vlgmr.msra.gmra.mrb[0].mxu0 %vm78_vm0, %v69_v4  ;;  %1886 = vmatpush3.bf16.msra.mxu1 %v2300_v13  ;;  %v2320_v23 = vpack.c.bf16 %v57_v22, %v56_v21  ;;  %v2326_v26 = vpack.c.bf16 %v59_v25, %v58_v24  ;;  %v60_v27 = vld [vmem:[#allocation5 + $0x50] sm:$0xff]  ;;  %v61_v28 = vld [vmem:[#allocation5 + $0x58] sm:$0xff]  ;;  %v62_v30 = vld [vmem:[#allocation5 + $0x60] sm:$0xff] }
  0x1c   :  { %1591 = vmatprep.mubr.msk.f32.mxu0 %vm78_vm0, %v70_v5  ;;  %1910 = vmatpush3.bf16.msra.mxu0 %v2300_v13  ;;  %v2332_v29 = vpack.c.bf16 %v61_v28, %v60_v27  ;;  %v63_v31 = vld [vmem:[#allocation5 + $0x68] sm:$0xff]  ;;  %v64_v33 = vld [vmem:[#allocation5 + $0x70] sm:$0xff]  ;;  %v65_v34 = vld [vmem:[#allocation5 + $0x78] sm:$0xff] }
  0x1d   :  { %1887 = vmatprep.subr.bf16.mxu1 %v2194_v14  ;;  %1911 = vmatprep.subr.bf16.mxu0 %v2194_v14  ;;  %v2338_v32 = vpack.c.bf16 %v63_v31, %v62_v30  ;;  %v2344_v35 = vpack.c.bf16 %v65_v34, %v64_v33 }
  0x1f   :  { %1592 = vmatmul.mubr.msk.f32.gmra.mrb[2].mxu0 %vm78_vm0, %v71_v6  ;;  %1889 = vmatpush3.bf16.msra.mxu1 %v2308_v17 }
  0x20   :  { %1594 = vmatprep.mubr.msk.f32.mxu0 %vm78_vm0, %v72_v7  ;;  %1913 = vmatpush3.bf16.msra.mxu0 %v2308_v17 }
  0x21   :  { %1890 = vmatprep.subr.bf16.mxu1 %v2194_v14  ;;  %1914 = vmatprep.subr.bf16.mxu0 %v2194_v14 }
  0x23   :  { %1595 = vmatmul.mubr.msk.f32.gmra.mrb[4].mxu0 %vm78_vm0, %v73_v8  ;;  %1892 = vmatpush3.bf16.msra.mxu1 %v2314_v20 }
  0x24   :  { %1597 = vmatprep.mubr.msk.f32.mxu0 %vm78_vm0, %v74_v9  ;;  %1916 = vmatpush3.bf16.msra.mxu0 %v2314_v20 }
  0x25   :  { %1893 = vmatprep.subr.bf16.mxu1 %v2194_v14  ;;  %1917 = vmatprep.subr.bf16.mxu0 %v2194_v14 }
  0x27   :  { %1598 = vmatmul.mubr.msk.f32.gmra.mrb[6].mxu0 %vm78_vm0, %v75_v10  ;;  %1895 = vmatpush3.bf16.msra.mxu1 %v2320_v23 }
  0x28   :  { %1919 = vmatpush3.bf16.msra.mxu0 %v2320_v23  ;;  %1896 = vmatprep.subr.bf16.mxu1 %v2194_v14 }
  0x29   :  { %1920 = vmatprep.subr.bf16.mxu0 %v2194_v14  ;;  %1667 = vmatprep.mubr.msk.f32.mxu0 %vm2195_vm1, %v2196_v36 }
  0x2b   :  { %1898 = vmatpush3.bf16.msra.mxu1 %v2326_v26 }
  0x2c   :  { %1922 = vmatpush3.bf16.msra.mxu0 %v2326_v26  ;;  %1899 = vmatprep.subr.bf16.mxu1 %v2194_v14 }
  0x2d   :  { %1923 = vmatprep.subr.bf16.mxu0 %v2194_v14 }
  0x2f   :  { %1901 = vmatpush3.bf16.msra.mxu1 %v2332_v29 }
  0x30   :  { %1925 = vmatpush3.bf16.msra.mxu0 %v2332_v29  ;;  %1902 = vmatprep.subr.bf16.mxu1 %v2194_v14 }
  0x31   :  { %1926 = vmatprep.subr.bf16.mxu0 %v2194_v14 }
  0x33   :  { %1904 = vmatpush3.bf16.msra.mxu1 %v2338_v32 }
  0x34   :  { %1928 = vmatpush3.bf16.msra.mxu0 %v2338_v32  ;;  %1905 = vmatprep.subr.bf16.mxu1 %v2194_v14 }
  0x35   :  { %1929 = vmatprep.subr.bf16.mxu0 %v2194_v14 }
  0x37   :  { %1907 = vmatpush3.bf16.msra.mxu1 %v2344_v35 }
  0x38   :  { %1931 = vmatpush3.bf16.msra.mxu0 %v2344_v35  ;;  %1932 = vmatprep.subr.bf16.mxu1 %v2194_v14 }
  0x39   :  { %1956 = vmatprep.subr.bf16.mxu0 %v2194_v14 }
  0xee   :  { %v1590_v37 = vpop.f32.mrb[0].mxu0 }
  0xef   :  { %v214_v38 = vrot.slane %v1590_v37, 4  ;;  %v169_v39 = vpop.f32.mrb[1].mxu0 }
  0xf0   :  { %v208_v40 = vrot.slane %v169_v39, 4 }
  0xf1   :  { %v215_v41 = vadd.f32 %v1590_v37, %v214_v38 }
  0xf2   :  { %v209_v42 = vadd.f32 %v208_v40, %v169_v39  ;;  %v1593_v43 = vpop.f32.mrb[2].mxu0 }
  0xf3   :  { %v216_v44 = vrot.slane %v215_v41, 2  ;;  %v226_v45 = vrot.slane %v1593_v43, 4  ;;  %v179_v46 = vpop.f32.mrb[3].mxu0 }
  0xf4   :  { %v210_v47 = vrot.slane %v209_v42, 2  ;;  %v220_v48 = vrot.slane %v179_v46, 4 }
  0xf5   :  { %v217_v49 = vadd.f32 %v216_v44, %v215_v41  ;;  %v227_v50 = vadd.f32 %v1593_v43, %v226_v45 }
  0xf6   :  { %v211_v51 = vadd.f32 %v210_v47, %v209_v42  ;;  %v221_v52 = vadd.f32 %v220_v48, %v179_v46  ;;  %v1596_v53 = vpop.f32.mrb[4].mxu0 }
  0xf7   :  { %v218_v54 = vrot.slane %v217_v49, 1  ;;  %v228_v55 = vrot.slane %v227_v50, 2  ;;  %v238_v56 = vrot.slane %v1596_v53, 4  ;;  %v189_v57 = vpop.f32.mrb[5].mxu0 }
  0xf8   :  { %v212_v58 = vrot.slane %v211_v51, 1  ;;  %v222_v59 = vrot.slane %v221_v52, 2  ;;  %v232_v60 = vrot.slane %v189_v57, 4 }
  0xf9   :  { %v219_v61 = vadd.f32 %v218_v54, %v217_v49  ;;  %v229_v62 = vadd.f32 %v228_v55, %v227_v50  ;;  %v239_v63 = vadd.f32 %v1596_v53, %v238_v56 }
  0xfa   :  { %v213_v1 = vadd.f32 %v212_v58, %v211_v51  ;;  %v223_v2 = vadd.f32 %v222_v59, %v221_v52  ;;  %v233_v3 = vadd.f32 %v232_v60, %v189_v57  ;;  %v1599_v4 = vpop.f32.mrb[6].mxu0 }
  0xfb   :  { %v258_v5 = vmul.f32 0.125, %v219_v61  ;;  %v230_v6 = vrot.slane %v229_v62, 1  ;;  %v240_v7 = vrot.slane %v239_v63, 2  ;;  %v250_v8 = vrot.slane %v1599_v4, 4  ;;  %v199_v9 = vpop.f32.mrb[7].mxu0 }
  0xfc   :  { %v257_v10 = vmul.f32 0.125, %v213_v1  ;;  %v224_v11 = vrot.slane %v223_v2, 1  ;;  %v234_v12 = vrot.slane %v233_v3, 2  ;;  %v244_v15 = vrot.slane %v199_v9, 4 }
  0xfd   :  { %v2354_v16 = vsub.f32 %v1590_v37, %v258_v5  ;;  %v231_v18 = vadd.f32 %v230_v6, %v229_v62  ;;  %v241_v19 = vadd.f32 %v240_v7, %v239_v63  ;;  %v251_v21 = vadd.f32 %v1599_v4, %v250_v8 }
  0xfe   :  { %v2356_v22 = vsub.f32 %v169_v39, %v257_v10  ;;  %v225_v24 = vadd.f32 %v224_v11, %v223_v2  ;;  %v235_v25 = vadd.f32 %v234_v12, %v233_v3  ;;  %v245_v27 = vadd.f32 %v244_v15, %v199_v9 }
  0xff   :  { %v274_v28 = vmul.f32 %v2354_v16, %v2354_v16  ;;  %v260_v30 = vmul.f32 0.125, %v231_v18  ;;  %v242_v31 = vrot.slane %v241_v19, 1  ;;  %v252_v33 = vrot.slane %v251_v21, 2 }
 0x100   :  { %v273_v34 = vmul.f32 %v2356_v22, %v2356_v22  ;;  %v259_v38 = vmul.f32 0.125, %v225_v24  ;;  %v236_v37 = vrot.slane %v235_v25, 1  ;;  %v246_v40 = vrot.slane %v245_v27, 2 }
 0x101   :  { %v287_v41 = vrot.slane %v274_v28, 4  ;;  %v2362_v42 = vsub.f32 %v1593_v43, %v260_v30  ;;  %v243_v39 = vadd.f32 %v242_v31, %v241_v19  ;;  %v253_v44 = vadd.f32 %v252_v33, %v251_v21 }
 0x102   :  { %v281_v45 = vrot.slane %v273_v34, 4  ;;  %v2364_v47 = vsub.f32 %v179_v46, %v259_v38  ;;  %v237_v48 = vadd.f32 %v236_v37, %v235_v25  ;;  %v247_v49 = vadd.f32 %v246_v40, %v245_v27 }
 0x103   :  { %v288_v50 = vadd.f32 %v287_v41, %v274_v28  ;;  %v276_v51 = vmul.f32 %v2362_v42, %v2362_v42  ;;  %v262_v52 = vmul.f32 0.125, %v243_v39  ;;  %v254_v54 = vrot.slane %v253_v44, 1 }
 0x104   :  { %v282_v55 = vadd.f32 %v281_v45, %v273_v34  ;;  %v275_v56 = vmul.f32 %v2364_v47, %v2364_v47  ;;  %v261_v58 = vmul.f32 0.125, %v237_v48  ;;  %v248_v43 = vrot.slane %v247_v49, 1 }
 0x105   :  { %v289_v59 = vrot.slane %v288_v50, 2  ;;  %v299_v60 = vrot.slane %v276_v51, 4  ;;  %v2370_v61 = vsub.f32 %v1596_v53, %v262_v52  ;;  %v255_v46 = vadd.f32 %v254_v54, %v253_v44 }
 0x106   :  { %v283_v62 = vrot.slane %v282_v55, 2  ;;  %v293_v63 = vrot.slane %v275_v56, 4  ;;  %v2372_v1 = vsub.f32 %v189_v57, %v261_v58  ;;  %v249_v2 = vadd.f32 %v248_v43, %v247_v49 }
 0x107   :  { %v290_v3 = vadd.f32 %v289_v59, %v288_v50  ;;  %v300_v5 = vadd.f32 %v299_v60, %v276_v51  ;;  %v278_v6 = vmul.f32 %v2370_v61, %v2370_v61  ;;  %v264_v7 = vmul.f32 0.125, %v255_v46 }
 0x108   :  { %v284_v8 = vadd.f32 %v283_v62, %v282_v55  ;;  %v294_v10 = vadd.f32 %v293_v63, %v275_v56  ;;  %v277_v11 = vmul.f32 %v2372_v1, %v2372_v1  ;;  %v263_v12 = vmul.f32 0.125, %v249_v2 }
 0x109   :  { %v291_v53 = vrot.slane %v290_v3, 1  ;;  %v301_v15 = vrot.slane %v300_v5, 2  ;;  %v311_v18 = vrot.slane %v278_v6, 4  ;;  %v2378_v19 = vsub.f32 %v1599_v4, %v264_v7 }
 0x10a   :  { %v285_v57 = vrot.slane %v284_v8, 1  ;;  %v295_v21 = vrot.slane %v294_v10, 2  ;;  %v305_v24 = vrot.slane %v277_v11, 4  ;;  %v2380_v25 = vsub.f32 %v199_v9, %v263_v12 }
 0x10b   :  { %v292_v27 = vadd.f32 %v291_v53, %v290_v3  ;;  %v302_v28 = vadd.f32 %v301_v15, %v300_v5  ;;  %v312_v30 = vadd.f32 %v311_v18, %v278_v6  ;;  %v280_v31 = vmul.f32 %v2378_v19, %v2378_v19 }
 0x10c   :  { %v286_v33 = vadd.f32 %v285_v57, %v284_v8  ;;  %v296_v34 = vadd.f32 %v295_v21, %v294_v10  ;;  %v306_v38 = vadd.f32 %v305_v24, %v277_v11  ;;  %v279_v37 = vmul.f32 %v2380_v25, %v2380_v25 }
 0x10d   :  { %v330_v40 = vmul.f32 0.125, %v292_v27  ;;  %v303_v4 = vrot.slane %v302_v28, 1  ;;  %v313_v41 = vrot.slane %v312_v30, 2  ;;  %v323_v39 = vrot.slane %v280_v31, 4  ;;  %v337_v27 = vld [vmem:[%s2668_s2] sm:$0x1] }
 0x10e   :  { %v329_v44 = vmul.f32 0.125, %v286_v33  ;;  %v297_v45 = vrot.slane %v296_v34, 1  ;;  %v307_v9 = vrot.slane %v306_v38, 2  ;;  %v317_v48 = vrot.slane %v279_v37, 4 }
 0x10f   :  { %v339_v49 = vadd.f32 1e-05, %v330_v40  ;;  %v304_v50 = vadd.f32 %v303_v4, %v302_v28  ;;  %v314_v51 = vadd.f32 %v313_v41, %v312_v30  ;;  %v324_v52 = vadd.f32 %v323_v39, %v280_v31 }
 0x110   :  { %v338_v54 = vadd.f32 1e-05, %v329_v44  ;;  %v298_v55 = vadd.f32 %v297_v45, %v296_v34  ;;  %v308_v56 = vadd.f32 %v307_v9, %v306_v38  ;;  %v318_v58 = vadd.f32 %v317_v48, %v279_v37  ;;  %v2397_v44 = vld [vmem:[%s2669_s3] ss:$0 sm:$0xff] }
 0x111   :  { %2087 = vrsqrt.f32 %v339_v49  ;;  %v332_v43 = vmul.f32 0.125, %v304_v50  ;;  %v315_v59 = vrot.slane %v314_v51, 1  ;;  %v325_v60 = vrot.slane %v324_v52, 2 }
 0x112   :  { %2089 = vrsqrt.f32 %v338_v54  ;;  %v331_v46 = vmul.f32 0.125, %v298_v55  ;;  %v309_v62 = vrot.slane %v308_v56, 1  ;;  %v319_v63 = vrot.slane %v318_v58, 2 }
 0x113   :  { %v316_v2 = vadd.f32 %v315_v59, %v314_v51  ;;  %v326_v3 = vadd.f32 %v325_v60, %v324_v52  ;;  %v341_v5 = vadd.f32 1e-05, %v332_v43  ;;  %v371_v12 = vshrl.u32 %v370_v0, 7 }
 0x114   :  { %v340_v6 = vadd.f32 1e-05, %v331_v46  ;;  %v310_v7 = vadd.f32 %v309_v62, %v308_v56  ;;  %v320_v8 = vadd.f32 %v319_v63, %v318_v58  ;;  %v2197_v60 = vmov 1.0  }
 0x115   :  { %v334_v10 = vmul.f32 0.125, %v316_v2  ;;  %v327_v11 = vrot.slane %v326_v3, 1  ;;  %v2390_v30 = vsub.s32 0, %v371_v12 }
 0x116   :  { %2091 = vrsqrt.f32 %v340_v6  ;;  %v333_v53 = vmul.f32 0.125, %v310_v7  ;;  %v321_v15 = vrot.slane %v320_v8, 1 }
 0x117   :  { %v343_v18 = vadd.f32 1e-05, %v334_v10  ;;  %v328_v57 = vadd.f32 %v327_v11, %v326_v3  ;;  %2093 = vrsqrt.f32 %v341_v5 }
 0x118   :  { %v342_v21 = vadd.f32 1e-05, %v333_v53  ;;  %v322_v24 = vadd.f32 %v321_v15, %v320_v8 }
 0x119   :  { %2095 = vrsqrt.f32 %v343_v18  ;;  %v336_v28 = vmul.f32 0.125, %v328_v57 }
 0x11a   :  { %v335_v31 = vmul.f32 0.125, %v322_v24  ;;  %2097 = vrsqrt.f32 %v342_v21 }
 0x11b   :  { %v2088_v33 = vpop.eup %2087  ;;  %v345_v34 = vadd.f32 1e-05, %v336_v28 }
 0x11c   :  { %v2090_v0 = vpop.eup %2089  ;;  %v355_v38 = vmul.f32 %v2088_v33, %v337_v27  ;;  %v344_v37 = vadd.f32 1e-05, %v335_v31 }
 0x11d   :  { %v354_v40 = vmul.f32 %v2090_v0, %v337_v27  ;;  %2099 = vrsqrt.f32 %v345_v34 }
 0x11e   :  { %v377_v4 = vrot.slane %v355_v38, %v2390_v30  ;;  %2101 = vrsqrt.f32 %v344_v37 }
 0x11f   :  { %v373_v41 = vrot.slane %v354_v40, %v2390_v30 }
 0x120   :  { %v2092_v39 = vpop.eup %2091  ;;  %v411_v45 = vmul.f32 %v377_v4, %v2354_v16 }
 0x121   :  { %v410_v9 = vmul.f32 %v373_v41, %v2356_v22  ;;  %v356_v48 = vmul.f32 %v2092_v39, %v337_v27  ;;  %v2094_v49 = vpop.eup %2093 }
 0x122   :  { %v426_v55 = vadd.f32 %v2397_v44, %v411_v45  ;;  %v357_v56 = vmul.f32 %v2094_v49, %v337_v27 }
 0x123   :  { %v2096_v50 = vpop.eup %2095  ;;  %v381_v51 = vrot.slane %v356_v48, %v2390_v30  ;;  %v425_v52 = vadd.f32 %v2397_v44, %v410_v9 }
 0x124   :  { %v359_v54 = vmul.f32 %v2096_v50, %v337_v27  ;;  %v2098_v43 = vpop.eup %2097  ;;  %v385_v5 = vrot.slane %v357_v56, %v2390_v30 }
 0x125   :  { %vm449_vm2 = vcmp.gt.f32.partialorder %v425_v52, 1.0  ;;  %v568_v58 = vmul.f32 0.9, %v425_v52  ;;  %v412_v22 = vmul.f32 %v381_v51, %v2364_v47  ;;  %v358_v8 = vmul.f32 %v2098_v43, %v337_v27 }
 0x126   :  { %v393_v59 = vrot.slane %v359_v54, %v2390_v30  ;;  %1633 = vmatmul.mubr.msk.f32.vlgmr.msra.gmra.mrb[0].mxu1 %vm449_vm2, %v2197_v60  ;;  %v567_v3 = vsel %vm449_vm2, 1.0, %v2196_v36  ;;  %v413_v15 = vmul.f32 %v385_v5, %v2362_v42 }
 0x127   :  { %v2100_v16 = vpop.eup %2099  ;;  %v569_v46 = vadd.f32 %v568_v58, %v426_v55  ;;  %1934 = vmatpush3.bf16.msra.mxu1 %v2300_v13  ;;  %1702 = vmatprep.mubr.msk.f32.mxu1 %vm2195_vm1, %v2196_v36  ;;  %v427_v11 = vadd.f32 %v2397_v44, %v412_v22 }
 0x128   :  { %v2102_v62 = vpop.eup %2101  ;;  %v415_v63 = vmul.f32 %v393_v59, %v2370_v61  ;;  %v361_v2 = vmul.f32 %v2100_v16, %v337_v27  ;;  %1935 = vmatprep.subr.bf16.mxu1 %v2194_v14 }
 0x129   :  { %v360_v6 = vmul.f32 %v2102_v62, %v337_v27  ;;  %v570_v7 = vsub.f32 %v569_v46, %v567_v3 }
 0x12a   :  { %v430_v47 = vadd.f32 %v2397_v44, %v415_v63  ;;  %v401_v10 = vrot.slane %v361_v2, %v2390_v30 }
 0x12b   :  { %v397_v12 = vrot.slane %v360_v6, %v2390_v30  ;;  %vm571_vm3 = vcmp.gt.f32.partialorder %v570_v7, 1.0  ;;  %v684_v61 = vmul.f32 0.9, %v570_v7  ;;  %1937 = vmatpush3.bf16.msra.mxu1 %v2308_v17 }
 0x12c   :  { %v417_v53 = vmul.f32 %v401_v10, %v2378_v19  ;;  %1668 = vmatmul.mubr.msk.f32.vlgmr.msra.gmra.mrb[8].mxu0 %vm571_vm3, %v2197_v60  ;;  %1938 = vmatprep.subr.bf16.mxu1 %v2194_v14  ;;  %v683_v24 = vsel %vm571_vm3, 1.0, %v2196_v36  ;;  %v389_v19 = vrot.slane %v358_v8, %v2390_v30 }
 0x12d   :  { %v416_v18 = vmul.f32 %v397_v12, %v2380_v25  ;;  %v685_v57 = vadd.f32 %v684_v61, %v427_v11  ;;  %1958 = vmatpush3.bf16.msra.mxu0 %v2300_v13  ;;  %1737 = vmatprep.mubr.msk.f32.mxu0 %vm2195_vm1, %v2196_v36  ;;  %v428_v25 = vadd.f32 %v2397_v44, %v413_v15 }
 0x12e   :  { %v432_v21 = vadd.f32 %v2397_v44, %v417_v53  ;;  %1959 = vmatprep.subr.bf16.mxu0 %v2194_v14  ;;  %v414_v31 = vmul.f32 %v389_v19, %v2372_v1 }
 0x12f   :  { %v431_v27 = vadd.f32 %v2397_v44, %v416_v18  ;;  %1940 = vmatpush3.bf16.msra.mxu1 %v2314_v20  ;;  %v686_v42 = vsub.f32 %v685_v57, %v683_v24 }
 0x130   :  { %1941 = vmatprep.subr.bf16.mxu1 %v2194_v14  ;;  %v429_v38 = vadd.f32 %v2397_v44, %v414_v31 }
 0x131   :  { %1961 = vmatpush3.bf16.msra.mxu0 %v2308_v17  ;;  %vm687_vm4 = vcmp.gt.f32.partialorder %v686_v42, 1.0  ;;  %v800_v28 = vmul.f32 0.9, %v686_v42 }
 0x132   :  { %1962 = vmatprep.subr.bf16.mxu0 %v2194_v14  ;;  %v799_v34 = vsel %vm687_vm4, 1.0, %v2196_v36 }
 0x133   :  { %1943 = vmatpush3.bf16.msra.mxu1 %v2320_v23  ;;  %v801_v33 = vadd.f32 %v800_v28, %v428_v25 }
 0x134   :  { %1944 = vmatprep.subr.bf16.mxu1 %v2194_v14 }
 0x135   :  { %1964 = vmatpush3.bf16.msra.mxu0 %v2314_v20  ;;  %v802_v0 = vsub.f32 %v801_v33, %v799_v34 }
 0x136   :  { %1965 = vmatprep.subr.bf16.mxu0 %v2194_v14 }
 0x137   :  { %1946 = vmatpush3.bf16.msra.mxu1 %v2326_v26  ;;  %vm803_vm5 = vcmp.gt.f32.partialorder %v802_v0, 1.0  ;;  %v916_v37 = vmul.f32 0.9, %v802_v0 }
 0x138   :  { %1947 = vmatprep.subr.bf16.mxu1 %v2194_v14  ;;  %v915_v40 = vsel %vm803_vm5, 1.0, %v2196_v36 }
 0x139   :  { %1967 = vmatpush3.bf16.msra.mxu0 %v2320_v23  ;;  %v917_v1 = vadd.f32 %v916_v37, %v429_v38 }
 0x13a   :  { %1968 = vmatprep.subr.bf16.mxu0 %v2194_v14 }
 0x13b   :  { %1949 = vmatpush3.bf16.msra.mxu1 %v2332_v29  ;;  %v2452_v4 = vsub.f32 %v917_v1, %v915_v40 }
 0x13c   :  { %1950 = vmatprep.subr.bf16.mxu1 %v2194_v14 }
 0x13d   :  { %1970 = vmatpush3.bf16.msra.mxu0 %v2326_v26  ;;  %vm919_vm6 = vcmp.gt.f32.partialorder %v2452_v4, 1.0  ;;  %v1032_v41 = vmul.f32 0.9, %v2452_v4  ;;  %v2573_v4 = vld [vmem:[%s2671_s5] sm:$0x1]  ;;  %s2198_s5 = smov [#allocation9]  }
 0x13e   :  { %1971 = vmatprep.subr.bf16.mxu0 %v2194_v14  ;;  %v1031_v44 = vsel %vm919_vm6, 1.0, %v2196_v36 }
 0x13f   :  { %1952 = vmatpush3.bf16.msra.mxu1 %v2338_v32  ;;  %v1033_v39 = vadd.f32 %v1032_v41, %v430_v47 }
 0x140   :  { %1953 = vmatprep.subr.bf16.mxu1 %v2194_v14 }
 0x141   :  { %1973 = vmatpush3.bf16.msra.mxu0 %v2332_v29  ;;  %v1034_v45 = vsub.f32 %v1033_v39, %v1031_v44 }
 0x142   :  { %1974 = vmatprep.subr.bf16.mxu0 %v2194_v14 }
 0x143   :  { %1955 = vmatpush3.bf16.msra.mxu1 %v2344_v35  ;;  %vm1035_vm7 = vcmp.gt.f32.partialorder %v1034_v45, 1.0  ;;  %v1148_v9 = vmul.f32 0.9, %v1034_v45 }
 0x144   :  { %1980 = vmatprep.subr.bf16.mxu1 %v2194_v14  ;;  %v1147_v49 = vsel %vm1035_vm7, 1.0, %v2196_v36 }
 0x145   :  { %1976 = vmatpush3.bf16.msra.mxu0 %v2338_v32  ;;  %v1149_v48 = vadd.f32 %v1148_v9, %v431_v27 }
 0x146   :  { %1703 = vmatmul.mubr.msk.f32.vlgmr.msra.gmra.mrb[2].mxu1 %vm687_vm4, %v2197_v60  ;;  %1977 = vmatprep.subr.bf16.mxu0 %v2194_v14 }
 0x147   :  { %1982 = vmatpush3.bf16.msra.mxu1 %v2300_v13  ;;  %1772 = vmatprep.mubr.msk.f32.mxu1 %vm2195_vm1, %v2196_v36  ;;  %v2477_v50 = vsub.f32 %v1149_v48, %v1147_v49 }
 0x148   :  { %1983 = vmatprep.subr.bf16.mxu1 %v2194_v14 }
 0x149   :  { %1979 = vmatpush3.bf16.msra.mxu0 %v2344_v35  ;;  %vm1151_vm8 = vcmp.gt.f32.partialorder %v2477_v50, 1.0  ;;  %v1264_v51 = vmul.f32 0.9, %v2477_v50 }
 0x14a   :  { %2004 = vmatprep.subr.bf16.mxu0 %v2194_v14  ;;  %v2493_v54 = vsel %vm1151_vm8, 1.0, %v2196_v36 }
 0x14b   :  { %1985 = vmatpush3.bf16.msra.mxu1 %v2308_v17  ;;  %v2485_v52 = vadd.f32 %v1264_v51, %v432_v21 }
 0x14c   :  { %1738 = vmatmul.mubr.msk.f32.vlgmr.msra.gmra.mrb[10].mxu0 %vm803_vm5, %v2197_v60  ;;  %1986 = vmatprep.subr.bf16.mxu1 %v2194_v14 }
 0x14d   :  { %2006 = vmatpush3.bf16.msra.mxu0 %v2300_v13  ;;  %1807 = vmatprep.mubr.msk.f32.mxu0 %vm2195_vm1, %v2196_v36  ;;  %v1266_v55 = vsub.f32 %v2485_v52, %v2493_v54  ;;  %v2582_v52 = vld [vmem:[%s2672_s6] ss:$0 sm:$0xff]  ;;  %s1396_s6 = sshll.u32 %s2198_s5, 4  ;;  %s1397_s6 = int_to_ptr.vmem [resolvable:$true] %s1396_s6 }
 0x14e   :  { %2007 = vmatprep.subr.bf16.mxu0 %v2194_v14  ;;  %s2141_s24 = scalar_lea.vmem %s1397_s6, 1024  ;;  %p2146_p9 = scmp.lt.s32.totalorder %s1397_s6, %s1397_s6 }
 0x14f   :  { %1988 = vmatpush3.bf16.msra.mxu1 %v2314_v20  ;;  %vm1267_vm9 = vcmp.gt.f32.partialorder %v1266_v55, 1.0  ;;  %p2142_p8 = scmp.ne.s32.totalorder %s1397_s6, %s2141_s24  ;;  %p2147_p10 = scmp.lt.s32.totalorder %s2141_s24, %s2141_s24 }
 0x150   :  { %1989 = vmatprep.subr.bf16.mxu1 %v2194_v14 }
 0x151   :  { %2009 = vmatpush3.bf16.msra.mxu0 %v2308_v17  ;;  %p2148_p11 = por %p2147_p10, %p2146_p9 }
 0x152   :  { %2010 = vmatprep.subr.bf16.mxu0 %v2194_v14 }
 0x153   :  { %1991 = vmatpush3.bf16.msra.mxu1 %v2320_v23  ;;  %p2149_p12 = pnand %p2148_p11, %p2142_p8 }
 0x154   :  { %1992 = vmatprep.subr.bf16.mxu1 %v2194_v14 }
 0x155   :  { %2012 = vmatpush3.bf16.msra.mxu0 %v2314_v20 }
 0x156   :  { %2013 = vmatprep.subr.bf16.mxu0 %v2194_v14 }
 0x157   :  { %1994 = vmatpush3.bf16.msra.mxu1 %v2326_v26 }
 0x158   :  { %1995 = vmatprep.subr.bf16.mxu1 %v2194_v14 }
 0x159   :  { %2015 = vmatpush3.bf16.msra.mxu0 %v2320_v23 }
 0x15a   :  { %2016 = vmatprep.subr.bf16.mxu0 %v2194_v14 }
 0x15b   :  { %1997 = vmatpush3.bf16.msra.mxu1 %v2332_v29 }
 0x15c   :  { %1998 = vmatprep.subr.bf16.mxu1 %v2194_v14 }
 0x15d   :  { %2018 = vmatpush3.bf16.msra.mxu0 %v2326_v26 }
 0x15e   :  { %2019 = vmatprep.subr.bf16.mxu0 %v2194_v14 }
 0x15f   :  { %2000 = vmatpush3.bf16.msra.mxu1 %v2338_v32 }
 0x160   :  { %2001 = vmatprep.subr.bf16.mxu1 %v2194_v14 }
 0x161   :  { %2021 = vmatpush3.bf16.msra.mxu0 %v2332_v29 }
 0x162   :  { %2022 = vmatprep.subr.bf16.mxu0 %v2194_v14 }
 0x163   :  { %2003 = vmatpush3.bf16.msra.mxu1 %v2344_v35 }
 0x164   :  { %2028 = vmatprep.subr.bf16.mxu1 %v2194_v14 }
 0x165   :  { %2024 = vmatpush3.bf16.msra.mxu0 %v2338_v32 }
 0x166   :  { %1773 = vmatmul.mubr.msk.f32.vlgmr.msra.gmra.mrb[4].mxu1 %vm919_vm6, %v2197_v60  ;;  %2025 = vmatprep.subr.bf16.mxu0 %v2194_v14 }
 0x167   :  { %2030 = vmatpush3.bf16.msra.mxu1 %v2300_v13  ;;  %1842 = vmatprep.mubr.msk.f32.mxu1 %vm2195_vm1, %v2196_v36 }
 0x168   :  { %2031 = vmatprep.subr.bf16.mxu1 %v2194_v14 }
 0x169   :  { %2027 = vmatpush3.bf16.msra.mxu0 %v2344_v35 }
 0x16a   :  { %2052 = vmatprep.subr.bf16.mxu0 %v2194_v14 }
 0x16b   :  { %2033 = vmatpush3.bf16.msra.mxu1 %v2308_v17 }
 0x16c   :  { %1808 = vmatmul.mubr.msk.f32.vlgmr.msra.gmra.mrb[12].mxu0 %vm1035_vm7, %v2197_v60  ;;  %2034 = vmatprep.subr.bf16.mxu1 %v2194_v14 }
 0x16d   :  { %2054 = vmatpush3.bf16.msra.mxu0 %v2300_v13  ;;  %1877 = vmatprep.mubr.msk.f32.mxu0 %vm2195_vm1, %v2196_v36 }
 0x16e   :  { %2055 = vmatprep.subr.bf16.mxu0 %v2194_v14 }
 0x16f   :  { %2036 = vmatpush3.bf16.msra.mxu1 %v2314_v20 }
 0x170   :  { %2037 = vmatprep.subr.bf16.mxu1 %v2194_v14 }
 0x171   :  { %2057 = vmatpush3.bf16.msra.mxu0 %v2308_v17 }
 0x172   :  { %2058 = vmatprep.subr.bf16.mxu0 %v2194_v14 }
 0x173   :  { %2039 = vmatpush3.bf16.msra.mxu1 %v2320_v23 }
 0x174   :  { %2040 = vmatprep.subr.bf16.mxu1 %v2194_v14 }
 0x175   :  { %2060 = vmatpush3.bf16.msra.mxu0 %v2314_v20 }
 0x176   :  { %2061 = vmatprep.subr.bf16.mxu0 %v2194_v14 }
 0x177   :  { %2042 = vmatpush3.bf16.msra.mxu1 %v2326_v26 }
 0x178   :  { %2043 = vmatprep.subr.bf16.mxu1 %v2194_v14 }
 0x179   :  { %2063 = vmatpush3.bf16.msra.mxu0 %v2320_v23 }
 0x17a   :  { %2064 = vmatprep.subr.bf16.mxu0 %v2194_v14 }
 0x17b   :  { %2045 = vmatpush3.bf16.msra.mxu1 %v2332_v29 }
 0x17c   :  { %2046 = vmatprep.subr.bf16.mxu1 %v2194_v14 }
 0x17d   :  { %2066 = vmatpush3.bf16.msra.mxu0 %v2326_v26 }
 0x17e   :  { %2067 = vmatprep.subr.bf16.mxu0 %v2194_v14 }
 0x17f   :  { %2048 = vmatpush3.bf16.msra.mxu1 %v2338_v32 }
 0x180   :  { %2049 = vmatprep.subr.bf16.mxu1 %v2194_v14 }
 0x181   :  { %2069 = vmatpush3.bf16.msra.mxu0 %v2332_v29 }
 0x182   :  { %2070 = vmatprep.subr.bf16.mxu0 %v2194_v14 }
 0x183   :  { %2051 = vmatpush3.bf16.msra.mxu1 %v2344_v35 }
 0x185   :  { %2072 = vmatpush3.bf16.msra.mxu0 %v2338_v32 }
 0x186   :  { %1843 = vmatmul.mubr.msk.f32.vlgmr.msra.gmra.mrb[6].mxu1 %vm1151_vm8, %v2197_v60  ;;  %2073 = vmatprep.subr.bf16.mxu0 %v2194_v14 }
 0x189   :  { %2075 = vmatpush3.bf16.msra.mxu0 %v2344_v35 }
 0x18c   :  { %1878 = vmatmul.mubr.msk.f32.vlgmr.msra.gmra.mrb[14].mxu0 %vm1267_vm9, %v2197_v60 }
 0x1f9   :  { %v518_v13 = vpop.f32.mrb[0].mxu1 }
 0x1fa   :  { %v522_v17 = vrot.slane %v518_v13, 4  ;;  %v1634_v20 = vpop.f32.mrb[1].mxu1 }
 0x1fc   :  { %v523_v23 = vadd.f32 %v522_v17, %v518_v13 }
 0x1fe   :  { %v524_v26 = vrot.slane %v523_v23, 2 }
 0x1ff   :  { %v640_v29 = vpop.f32.mrb[8].mxu0 }
 0x200   :  { %v525_v56 = vadd.f32 %v524_v26, %v523_v23  ;;  %v644_v58 = vrot.slane %v640_v29, 4  ;;  %v1669_v32 = vpop.f32.mrb[9].mxu0 }
 0x202   :  { %v526_v43 = vrot.slane %v525_v56, 1  ;;  %v645_v59 = vadd.f32 %v644_v58, %v640_v29 }
 0x204   :  { %v527_v16 = vadd.f32 %v526_v43, %v525_v56  ;;  %v646_v22 = vrot.slane %v645_v59, 2 }
 0x206   :  { %v528_v46 = vmul.f32 0.125, %v527_v16  ;;  %v647_v14 = vadd.f32 %v646_v22, %v645_v59 }
 0x208   :  { %v529_v62 = vsub.f32 %v518_v13, %v528_v46  ;;  %v648_v35 = vrot.slane %v647_v14, 1 }
 0x20a   :  { %v530_v63 = vmul.f32 %v529_v62, %v529_v62  ;;  %v649_v2 = vadd.f32 %v648_v35, %v647_v14 }
 0x20c   :  { %v531_v60 = vrot.slane %v530_v63, 4  ;;  %v650_v3 = vmul.f32 0.125, %v649_v2 }
 0x20e   :  { %v532_v5 = vadd.f32 %v531_v60, %v530_v63  ;;  %v651_v6 = vsub.f32 %v640_v29, %v650_v3 }
 0x210   :  { %v533_v7 = vrot.slane %v532_v5, 2  ;;  %v652_v47 = vmul.f32 %v651_v6, %v651_v6 }
 0x212   :  { %v534_v8 = vadd.f32 %v533_v7, %v532_v5  ;;  %v653_v10 = vrot.slane %v652_v47, 4 }
 0x214   :  { %v535_v11 = vrot.slane %v534_v8, 1  ;;  %v654_v12 = vadd.f32 %v653_v10, %v652_v47 }
 0x216   :  { %v536_v61 = vadd.f32 %v535_v11, %v534_v8  ;;  %v655_v53 = vrot.slane %v654_v12, 2 }
 0x218   :  { %v537_v15 = vmul.f32 0.125, %v536_v61  ;;  %v656_v18 = vadd.f32 %v655_v53, %v654_v12 }
 0x219   :  { %v756_v57 = vpop.f32.mrb[2].mxu1 }
 0x21a   :  { %v538_v21 = vadd.f32 1e-05, %v537_v15  ;;  %v657_v24 = vrot.slane %v656_v18, 1  ;;  %v760_v19 = vrot.slane %v756_v57, 4  ;;  %v1704_v27 = vpop.f32.mrb[3].mxu1 }
 0x21c   :  { %2103 = vrsqrt.f32 %v538_v21  ;;  %v658_v42 = vadd.f32 %v657_v24, %v656_v18  ;;  %v761_v25 = vadd.f32 %v760_v19, %v756_v57 }
 0x21e   :  { %v659_v28 = vmul.f32 0.125, %v658_v42  ;;  %v762_v31 = vrot.slane %v761_v25, 2 }
 0x21f   :  { %v872_v33 = vpop.f32.mrb[10].mxu0 }
 0x220   :  { %v660_v34 = vadd.f32 1e-05, %v659_v28  ;;  %v763_v0 = vadd.f32 %v762_v31, %v761_v25  ;;  %v876_v38 = vrot.slane %v872_v33, 4  ;;  %v1739_v37 = vpop.f32.mrb[11].mxu0 }
 0x222   :  { %2105 = vrsqrt.f32 %v660_v34  ;;  %v764_v1 = vrot.slane %v763_v0, 1  ;;  %v877_v40 = vadd.f32 %v876_v38, %v872_v33 }
 0x224   :  { %v765_v41 = vadd.f32 %v764_v1, %v763_v0  ;;  %v878_v39 = vrot.slane %v877_v40, 2 }
 0x226   :  { %v2104_v44 = vpop.eup %2103  ;;  %v766_v45 = vmul.f32 0.125, %v765_v41  ;;  %v879_v9 = vadd.f32 %v878_v39, %v877_v40 }
 0x227   :  { %v540_v48 = vmul.f32 %v2104_v44, %v2573_v4 }
 0x228   :  { %v2576_v49 = vsub.f32 %v756_v57, %v766_v45  ;;  %v880_v50 = vrot.slane %v879_v9, 1 }
 0x229   :  { %v545_v51 = vrot.slane %v540_v48, %v2390_v30 }
 0x22a   :  { %v768_v54 = vmul.f32 %v2576_v49, %v2576_v49  ;;  %v881_v55 = vadd.f32 %v880_v50, %v879_v9 }
 0x22b   :  { %v547_v13 = vmul.f32 %v545_v51, %v529_v62 }
 0x22c   :  { %v2106_v17 = vpop.eup %2105  ;;  %v769_v20 = vrot.slane %v768_v54, 4  ;;  %v882_v23 = vmul.f32 0.125, %v881_v55 }
 0x22d   :  { %v554_v26 = vadd.f32 %v2582_v52, %v547_v13  ;;  %v662_v29 = vmul.f32 %v2106_v17, %v2573_v4 }
 0x22e   :  { %v770_v56 = vadd.f32 %v769_v20, %v768_v54  ;;  %v2588_v58 = vsub.f32 %v872_v33, %v882_v23 }
 0x22f   :  { %vm560_vm10 = vcmp.gt.f32.partialorder %v554_v26, 1.0  ;;  %564 = vst [vmem:[#allocation9] sm:$0xff] %v554_v26  ;;  %v667_v32 = vrot.slane %v662_v29, %v2390_v30  ;;  %v671_v63 = vmul.f32 0.9, %v554_v26 }
 0x230   :  { %v561_v43 = vsel %vm560_vm10, 1.0, %v2196_v36  ;;  %v771_v59 = vrot.slane %v770_v56, 2  ;;  %v884_v16 = vmul.f32 %v2588_v58, %v2588_v58 }
 0x231   :  { %v562_v22 = vpack.c.bf16 %v561_v43, %v561_v43  ;;  %v669_v46 = vmul.f32 %v667_v32, %v651_v6 }
 0x232   :  { %v772_v14 = vadd.f32 %v771_v59, %v770_v56  ;;  %v885_v62 = vrot.slane %v884_v16, 4 }
 0x233   :  { %563 = vst [vmem:[#allocation8] sm:$0xf] %v562_v22  ;;  %v670_v35 = vadd.f32 %v2582_v52, %v669_v46 }
 0x234   :  { %v773_v2 = vrot.slane %v772_v14, 1  ;;  %v886_v60 = vadd.f32 %v885_v62, %v884_v16 }
 0x235   :  { %v672_v3 = vadd.f32 %v671_v63, %v670_v35 }
 0x236   :  { %v774_v5 = vadd.f32 %v773_v2, %v772_v14  ;;  %v887_v7 = vrot.slane %v886_v60, 2 }
 0x237   :  { %v673_v47 = vsub.f32 %v672_v3, %v561_v43 }
 0x238   :  { %v775_v8 = vmul.f32 0.125, %v774_v5  ;;  %v888_v10 = vadd.f32 %v887_v7, %v886_v60 }
 0x239   :  { %680 = vst [vmem:[#allocation9 + $0x8] sm:$0xff] %v673_v47  ;;  %vm674_vm11 = vcmp.gt.f32.partialorder %v673_v47, 1.0  ;;  %v988_v11 = vpop.f32.mrb[4].mxu1  ;;  %v787_v17 = vmul.f32 0.9, %v673_v47 }
 0x23a   :  { %v675_v12 = vsel %vm674_vm11, 1.0, %v2196_v36  ;;  %v776_v6 = vadd.f32 1e-05, %v775_v8  ;;  %v889_v61 = vrot.slane %v888_v10, 1  ;;  %v992_v53 = vrot.slane %v988_v11, 4  ;;  %v1774_v15 = vpop.f32.mrb[5].mxu1 }
 0x23b   :  { %v676_v18 = vpack.c.bf16 %v675_v12, %v675_v12 }
 0x23c   :  { %2107 = vrsqrt.f32 %v776_v6  ;;  %v890_v57 = vadd.f32 %v889_v61, %v888_v10  ;;  %v993_v21 = vadd.f32 %v992_v53, %v988_v11 }
 0x23d   :  { %678 = vst [vmem:[#allocation8 + $0x4] sm:$0xf] %v676_v18 }
 0x23e   :  { %v891_v24 = vmul.f32 0.125, %v890_v57  ;;  %v994_v19 = vrot.slane %v993_v21, 2 }
 0x23f   :  { %v1104_v27 = vpop.f32.mrb[12].mxu0 }
 0x240   :  { %v892_v42 = vadd.f32 1e-05, %v891_v24  ;;  %v995_v25 = vadd.f32 %v994_v19, %v993_v21  ;;  %v1108_v28 = vrot.slane %v1104_v27, 4  ;;  %v1809_v31 = vpop.f32.mrb[13].mxu0 }
 0x242   :  { %2109 = vrsqrt.f32 %v892_v42  ;;  %v996_v33 = vrot.slane %v995_v25, 1  ;;  %v1109_v34 = vadd.f32 %v1108_v28, %v1104_v27 }
 0x244   :  { %v997_v0 = vadd.f32 %v996_v33, %v995_v25  ;;  %v1110_v38 = vrot.slane %v1109_v34, 2 }
 0x246   :  { %v2108_v37 = vpop.eup %2107  ;;  %v998_v1 = vmul.f32 0.125, %v997_v0  ;;  %v1111_v40 = vadd.f32 %v1110_v38, %v1109_v34 }
 0x247   :  { %v778_v41 = vmul.f32 %v2108_v37, %v2573_v4 }
 0x248   :  { %v2597_v39 = vsub.f32 %v988_v11, %v998_v1  ;;  %v1112_v44 = vrot.slane %v1111_v40, 1 }
 0x249   :  { %v783_v45 = vrot.slane %v778_v41, %v2390_v30 }
 0x24a   :  { %v1000_v9 = vmul.f32 %v2597_v39, %v2597_v39  ;;  %v1113_v48 = vadd.f32 %v1112_v44, %v1111_v40 }
 0x24b   :  { %v785_v50 = vmul.f32 %v783_v45, %v2576_v49 }
 0x24c   :  { %v2110_v51 = vpop.eup %2109  ;;  %v1001_v54 = vrot.slane %v1000_v9, 4  ;;  %v1114_v55 = vmul.f32 0.125, %v1113_v48 }
 0x24d   :  { %v786_v13 = vadd.f32 %v2582_v52, %v785_v50  ;;  %v894_v20 = vmul.f32 %v2110_v51, %v2573_v4 }
 0x24e   :  { %v1002_v23 = vadd.f32 %v1001_v54, %v1000_v9  ;;  %v2605_v26 = vsub.f32 %v1104_v27, %v1114_v55 }
 0x24f   :  { %v788_v29 = vadd.f32 %v787_v17, %v786_v13  ;;  %v899_v56 = vrot.slane %v894_v20, %v2390_v30 }
 0x250   :  { %v1003_v32 = vrot.slane %v1002_v23, 2  ;;  %v1116_v43 = vmul.f32 %v2605_v26, %v2605_v26 }
 0x251   :  { %v789_v59 = vsub.f32 %v788_v29, %v675_v12  ;;  %v901_v49 = vmul.f32 %v899_v56, %v2588_v58 }
 0x252   :  { %v1004_v16 = vadd.f32 %v1003_v32, %v1002_v23  ;;  %v1117_v22 = vrot.slane %v1116_v43, 4 }
 0x253   :  { %796 = vst [vmem:[#allocation9 + $0x10] sm:$0xff] %v789_v59  ;;  %vm790_vm12 = vcmp.gt.f32.partialorder %v789_v59, 1.0  ;;  %v902_v46 = vadd.f32 %v2582_v52, %v901_v49  ;;  %v903_v14 = vmul.f32 0.9, %v789_v59 }
 0x254   :  { %v791_v62 = vsel %vm790_vm12, 1.0, %v2196_v36  ;;  %v1005_v35 = vrot.slane %v1004_v16, 1  ;;  %v1118_v63 = vadd.f32 %v1117_v22, %v1116_v43 }
 0x255   :  { %v792_v2 = vpack.c.bf16 %v791_v62, %v791_v62  ;;  %v904_v60 = vadd.f32 %v903_v14, %v902_v46 }
 0x256   :  { %v1006_v3 = vadd.f32 %v1005_v35, %v1004_v16  ;;  %v1119_v5 = vrot.slane %v1118_v63, 2 }
 0x257   :  { %794 = vst [vmem:[#allocation8 + $0x8] sm:$0xf] %v792_v2  ;;  %v905_v7 = vsub.f32 %v904_v60, %v791_v62 }
 0x258   :  { %v1007_v47 = vmul.f32 0.125, %v1006_v3  ;;  %v1120_v8 = vadd.f32 %v1119_v5, %v1118_v63 }
 0x259   :  { %912 = vst [vmem:[#allocation9 + $0x18] sm:$0xff] %v905_v7  ;;  %vm906_vm13 = vcmp.gt.f32.partialorder %v905_v7, 1.0  ;;  %v1220_v58 = vpop.f32.mrb[6].mxu1  ;;  %v1019_v13 = vmul.f32 0.9, %v905_v7 }
 0x25a   :  { %v907_v10 = vsel %vm906_vm13, 1.0, %v2196_v36  ;;  %v1008_v11 = vadd.f32 1e-05, %v1007_v47  ;;  %v1121_v12 = vrot.slane %v1120_v8, 1  ;;  %v1224_v6 = vrot.slane %v1220_v58, 4  ;;  %v1844_v61 = vpop.f32.mrb[7].mxu1 }
 0x25b   :  { %v908_v53 = vpack.c.bf16 %v907_v10, %v907_v10 }
 0x25c   :  { %2111 = vrsqrt.f32 %v1008_v11  ;;  %v1122_v15 = vadd.f32 %v1121_v12, %v1120_v8  ;;  %v1225_v18 = vadd.f32 %v1224_v6, %v1220_v58 }
 0x25d   :  { %910 = vst [vmem:[#allocation8 + $0xc] sm:$0xf] %v908_v53 }
 0x25e   :  { %v1123_v57 = vmul.f32 0.125, %v1122_v15  ;;  %v1226_v21 = vrot.slane %v1225_v18, 2 }
 0x25f   :  { %v1336_v24 = vpop.f32.mrb[14].mxu0 }
 0x260   :  { %v1124_v19 = vadd.f32 1e-05, %v1123_v57  ;;  %v1227_v27 = vadd.f32 %v1226_v21, %v1225_v18  ;;  %v1340_v42 = vrot.slane %v1336_v24, 4  ;;  %v1879_v25 = vpop.f32.mrb[15].mxu0 }
 0x262   :  { %2113 = vrsqrt.f32 %v1124_v19  ;;  %v1228_v28 = vrot.slane %v1227_v27, 1  ;;  %v1341_v31 = vadd.f32 %v1340_v42, %v1336_v24 }
 0x264   :  { %v1229_v33 = vadd.f32 %v1228_v28, %v1227_v27  ;;  %v1342_v34 = vrot.slane %v1341_v31, 2 }
 0x266   :  { %v2112_v0 = vpop.eup %2111  ;;  %v1230_v38 = vmul.f32 0.125, %v1229_v33  ;;  %v1343_v37 = vadd.f32 %v1342_v34, %v1341_v31 }
 0x267   :  { %v1010_v1 = vmul.f32 %v2112_v0, %v2573_v4 }
 0x268   :  { %v1231_v40 = vsub.f32 %v1220_v58, %v1230_v38  ;;  %v1344_v41 = vrot.slane %v1343_v37, 1 }
 0x269   :  { %v1015_v44 = vrot.slane %v1010_v1, %v2390_v30 }
 0x26a   :  { %v1232_v45 = vmul.f32 %v1231_v40, %v1231_v40  ;;  %v1345_v9 = vadd.f32 %v1344_v41, %v1343_v37 }
 0x26b   :  { %v1017_v48 = vmul.f32 %v1015_v44, %v2597_v39 }
 0x26c   :  { %v2114_v50 = vpop.eup %2113  ;;  %v1233_v51 = vrot.slane %v1232_v45, 4  ;;  %v1346_v54 = vmul.f32 0.125, %v1345_v9 }
 0x26d   :  { %v1018_v55 = vadd.f32 %v2582_v52, %v1017_v48  ;;  %v1126_v17 = vmul.f32 %v2114_v50, %v2573_v4 }
 0x26e   :  { %v1234_v20 = vadd.f32 %v1233_v51, %v1232_v45  ;;  %v1347_v23 = vsub.f32 %v1336_v24, %v1346_v54 }
 0x26f   :  { %v1020_v29 = vadd.f32 %v1019_v13, %v1018_v55  ;;  %v1131_v56 = vrot.slane %v1126_v17, %v2390_v30 }
 0x270   :  { %v1235_v32 = vrot.slane %v1234_v20, 2  ;;  %v1348_v43 = vmul.f32 %v1347_v23, %v1347_v23 }
 0x271   :  { %v1021_v59 = vsub.f32 %v1020_v29, %v907_v10  ;;  %v1133_v49 = vmul.f32 %v1131_v56, %v2605_v26 }
 0x272   :  { %v1236_v16 = vadd.f32 %v1235_v32, %v1234_v20  ;;  %v1349_v39 = vrot.slane %v1348_v43, 4 }
 0x273   :  { %1028 = vst [vmem:[#allocation9 + $0x20] sm:$0xff] %v1021_v59  ;;  %vm1022_vm14 = vcmp.gt.f32.partialorder %v1021_v59, 1.0  ;;  %v1134_v22 = vadd.f32 %v2582_v52, %v1133_v49  ;;  %v1135_v46 = vmul.f32 0.9, %v1021_v59 }
 0x274   :  { %v1023_v14 = vsel %vm1022_vm14, 1.0, %v2196_v36  ;;  %v1237_v62 = vrot.slane %v1236_v16, 1  ;;  %v1350_v35 = vadd.f32 %v1349_v39, %v1348_v43 }
 0x275   :  { %v1024_v63 = vpack.c.bf16 %v1023_v14, %v1023_v14  ;;  %v1136_v2 = vadd.f32 %v1135_v46, %v1134_v22 }
 0x276   :  { %v1238_v60 = vadd.f32 %v1237_v62, %v1236_v16  ;;  %v1351_v3 = vrot.slane %v1350_v35, 2 }
 0x277   :  { %1026 = vst [vmem:[#allocation8 + $0x10] sm:$0xf] %v1024_v63  ;;  %v1137_v5 = vsub.f32 %v1136_v2, %v1023_v14 }
 0x278   :  { %v1239_v7 = vmul.f32 0.125, %v1238_v60  ;;  %v1352_v47 = vadd.f32 %v1351_v3, %v1350_v35 }
 0x279   :  { %1144 = vst [vmem:[#allocation9 + $0x28] sm:$0xff] %v1137_v5  ;;  %vm1138_vm15 = vcmp.gt.f32.partialorder %v1137_v5, 1.0  ;;  %v1251_v24 = vmul.f32 0.9, %v1137_v5 }
 0x27a   :  { %v1139_v26 = vsel %vm1138_vm15, 1.0, %v2196_v36  ;;  %v1240_v8 = vadd.f32 1e-05, %v1239_v7  ;;  %v1353_v58 = vrot.slane %v1352_v47, 1 }
 0x27b   :  { %v1140_v10 = vpack.c.bf16 %v1139_v26, %v1139_v26 }
 0x27c   :  { %2115 = vrsqrt.f32 %v1240_v8  ;;  %v1354_v11 = vadd.f32 %v1353_v58, %v1352_v47 }
 0x27d   :  { %1142 = vst [vmem:[#allocation8 + $0x14] sm:$0xf] %v1140_v10 }
 0x27e   :  { %v1355_v12 = vmul.f32 0.125, %v1354_v11 }
 0x280   :  { %v1356_v6 = vadd.f32 1e-05, %v1355_v12 }
 0x282   :  { %2117 = vrsqrt.f32 %v1356_v6 }
 0x286   :  { %v2116_v61 = vpop.eup %2115 }
 0x287   :  { %v1242_v53 = vmul.f32 %v2116_v61, %v2573_v4 }
 0x289   :  { %v1247_v15 = vrot.slane %v1242_v53, %v2390_v30 }
 0x28b   :  { %v1249_v18 = vmul.f32 %v1247_v15, %v1231_v40 }
 0x28c   :  { %v2118_v57 = vpop.eup %2117 }
 0x28d   :  { %v1250_v21 = vadd.f32 %v2582_v52, %v1249_v18  ;;  %v1358_v19 = vmul.f32 %v2118_v57, %v2573_v4 }
 0x28f   :  { %v1252_v27 = vadd.f32 %v1251_v24, %v1250_v21  ;;  %v1363_v42 = vrot.slane %v1358_v19, %v2390_v30 }
 0x291   :  { %v1253_v25 = vsub.f32 %v1252_v27, %v1139_v26  ;;  %v1365_v28 = vmul.f32 %v1363_v42, %v1347_v23 }
 0x293   :  { %1260 = vst [vmem:[#allocation9 + $0x30] sm:$0xff] %v1253_v25  ;;  %vm1254_vm0 = vcmp.gt.f32.partialorder %v1253_v25, 1.0  ;;  %v1366_v31 = vadd.f32 %v2582_v52, %v1365_v28  ;;  %v1367_v33 = vmul.f32 0.9, %v1253_v25 }
 0x294   :  { %v1255_v34 = vsel %vm1254_vm0, 1.0, %v2196_v36 }
 0x295   :  { %v1256_v0 = vpack.c.bf16 %v1255_v34, %v1255_v34  ;;  %v1368_v38 = vadd.f32 %v1367_v33, %v1366_v31 }
 0x297   :  { %1258 = vst [vmem:[#allocation8 + $0x18] sm:$0xf] %v1256_v0  ;;  %v1369_v4 = vsub.f32 %v1368_v38, %v1255_v34 }
 0x299   :  { %vm1370_vm1 = vcmp.gt.f32.partialorder %v1369_v4, 1.0  ;;  %1376 = vst [vmem:[#allocation9 + $0x38] sm:$0xff] %v1369_v4 }
 0x29a   :  { %v1371_v30 = vsel %vm1370_vm1, 1.0, %v2196_v36 }
 0x29b   :  { %2152 = shalt.err (!%p2149_p12)
}
 0x29c   :  { %s2153_s26 = scalar_lea.hbm %s2674_s8, 1024 }
 0x29d   :  { %p2154_p13 = scmp.ne.s32.totalorder %s2674_s8, %s2153_s26  ;;  %p2157_p0 = scmp.lt.u32.totalorder %s2153_s26, %s2674_s8 }
 0x29f   :  { %p2159_p1 = pnand %p2157_p0, %p2154_p13 }
 0x2a1   :  { %2162 = shalt.err (!%p2159_p1)
}
 0x2a2   :  { %1402 = dma.vmem_to_hbm [thread:$0]  %s1397_s6, 1024, %s2674_s8, [#allocation10], %s2192_s15, %s2192_s15, %s2193_s16   ;;  %v1372_v36 = vpack.c.bf16 %v1371_v30, %v1371_v30 }
 0x2a3   :  { %s2163_s10 = scalar_lea.vmem %s2631_s23, 512  ;;  %p2168_p3 = scmp.lt.s32.totalorder %s2631_s23, %s2631_s23 }
 0x2a4   :  { %1374 = vst [vmem:[#allocation8 + $0x1c] sm:$0xf] %v1372_v36  ;;  %p2164_p2 = scmp.ne.s32.totalorder %s2631_s23, %s2163_s10  ;;  %p2169_p4 = scmp.lt.s32.totalorder %s2163_s10, %s2163_s10 }
 0x2a6   :  { %p2170_p5 = por %p2169_p4, %p2168_p3 }
 0x2a8   :  { %p2171_p6 = pnand %p2170_p5, %p2164_p2 }
 0x2aa   :  { %2174 = shalt.err (!%p2171_p6)
}
 0x2ab   :  { %s2175_s13 = scalar_lea.hbm %s2673_s7, 512 }
 0x2ac   :  { %p2176_p7 = scmp.ne.s32.totalorder %s2673_s7, %s2175_s13  ;;  %p2179_p8 = scmp.lt.u32.totalorder %s2175_s13, %s2673_s7 }
 0x2ae   :  { %p2181_p9 = pnand %p2179_p8, %p2176_p7 }
 0x2b0   :  { %2184 = shalt.err (!%p2181_p9)
}
 0x2b1   :  { %s2200_s15 = smov 64   ;;  %s2201_s16 = smov 4  }
 0x2b2   :  { %1390 = dma.vmem_to_hbm [thread:$0]  %s2631_s23, 512, %s2673_s7, [#allocation7], %s2200_s15, %s2200_s15, %s2201_s16  }
 0x2b3   :  { %2187 = dma.done.wait [#allocation7], 512  }
 0x2b4   :  { %2188 = vsyncadd [#allocation7], 4294966784 }
 0x2b5   :  { %2189 = dma.done.wait [#allocation10], 1024  }
 0x2b6   :  { %2190 = vsyncadd [#allocation10], 4294966272 }
 0x2b7   :  { %1409 = vsyncpa [#allocation6], 1 }
 0x2b8   :  { %1410 = vsyncpa [#allocation7], 1 }
 0x2b9   :  { %1411 = vsyncpa [#allocation10], 1 }

</bundles_post_ra>
